<compile_context>
chip_gen: v7x
topology: tpu7x:2x2x1
jax: 0.10.0
libtpu: 0.0.40
codegen_flags: <defaults>
</compile_context>

<pallas_src>
import functools

import jax
import jax.numpy as jnp
from jax.experimental import pallas as pl
from jax.experimental.pallas import tpu as pltpu

LANES = 128


def _round_up(x, m):
    return (x + m - 1) // m * m


def _pick_row_tile(out_rows, max_rows=256):
    """Flattened output rows per grid step.

    Small outputs -> one sublane-aligned (x16) tile covering everything;
    large outputs -> a fixed 256-row tile (multiple of 128, lane/sublane
    friendly).  The output row axis is zero-padded up to a multiple of the
    tile, so there is no divisor hunting and no oversized fallback tile.
    """
    if out_rows <= max_rows:
        return _round_up(out_rows, 16)
    return max_rows


# ----------------------------------------------------------------------------
# Pallas kernel: fused Conv3x3(stride 2, pad 1) + bias + ReLU for one block
# ----------------------------------------------------------------------------
def _conv_stage_kernel(flat_ref, w_ref, b_ref, o_ref, a_ref, *, taps, trw, cin,
                       align, single_row_tile):
    """
    flat_ref: (1, 4, FLAT_PAD, Cin)  bf16 phase-decomposed padded activations
    w_ref:    (9*Cin, Cout)          bf16 fused-tap weight matrix
    b_ref:    (1, Cout)              f32 bias
    o_ref:    (1, TRW, Cout)         bf16 output block (row-flattened)
    a_ref:    (TRW, 9*Cin)           bf16 VMEM scratch: per-tile im2col block
    """
    if single_row_tile:
        base = 0
    else:
        base = pl.multiple_of(pl.program_id(1) * trw, align)

    # Build the per-tile im2col block in VMEM (one column group per tap) so the
    # contraction is one K = 9*Cin MXU matmul instead of nine tiny-K matmuls
    # with repeated (trw, Cout) accumulator read-modify-writes.
    for t, (phase, off) in enumerate(taps):
        a_ref[:, t * cin:(t + 1) * cin] = \
            flat_ref[0, phase, pl.ds(base + off, trw), :]

    acc = jnp.dot(a_ref[...], w_ref[...], preferred_element_type=jnp.float32)
    acc = acc + b_ref[...]                      # bias + ReLU stay in f32
    o_ref[0] = jnp.maximum(acc, 0.0).astype(o_ref.dtype)


# ----------------------------------------------------------------------------
# One backbone stage: Conv3x3 stride-2 pad-1 + ReLU (NHWC)
# ----------------------------------------------------------------------------
def conv3x3_s2_relu(x, w, b):
    """x: (N, H, W, Cin) NHWC (f32/bf16); w: (3, 3, Cin, Cout) HWIO; b: (Cout,)."""
    N, H, W, Cin = x.shape
    assert H % 2 == 0 and W % 2 == 0, "phase decomposition assumes even H/W"
    Cout = w.shape[-1]
    Ho, Wo = H // 2, W // 2
    Wo1 = Wo + 1                       # phase width (includes the halo column)
    out_rows = Ho * Wo1                # flattened output rows (halo included)

    # --- tiling --------------------------------------------------------------
    trw = _pick_row_tile(out_rows)
    padded_rows = _round_up(out_rows, trw)
    r_tiles = padded_rows // trw
    align = 128 if trw % 128 == 0 else 16

    # tap (kh, kw) -> (phase index, flattened row offset inside the phase)
    taps = tuple(((kh % 2) * 2 + (kw % 2), (kh // 2) * Wo1 + (kw // 2))
                 for kh in range(3) for kw in range(3))
    max_off = Wo1 + 1

    # --- phase decomposition (space-to-depth removes the stride) -------------
    # Cast to bf16 first (halves wrapper HBM traffic) and use a single pad:
    # conv halo + enough bottom rows that every row-tile's tap slices (even on
    # the zero-padded output rows) stay in bounds.
    need_rows = padded_rows + max_off
    extra_h = max(-(-need_rows // Wo1) - (Ho + 1), 0)
    xb = x.astype(jnp.bfloat16)
    xp = jnp.pad(xb, ((0, 0), (1, 1 + 2 * extra_h), (1, 1), (0, 0)))
    ph = jnp.stack([xp[:, i::2, j::2, :] for i in (0, 1) for j in (0, 1)],
                   axis=1)                                 # (N,4,Ho+1+eh,Wo1,Cin)
    flat_pad = (Ho + 1 + extra_h) * Wo1
    flat = ph.reshape(N, 4, flat_pad, Cin)

    # --- weights / bias -------------------------------------------------------
    # Fused-tap weight matrix (K = 9*Cin); output stays at the true Cout so HBM
    # writeback carries no channel padding (a few masked stores are cheaper).
    wk = w.reshape(9 * Cin, Cout).astype(jnp.bfloat16)
    bk = b.astype(jnp.float32).reshape(1, Cout)

    kernel = functools.partial(_conv_stage_kernel, taps=taps, trw=trw, cin=Cin,
                               align=align, single_row_tile=(r_tiles == 1))

    flops = int(2 * N * padded_rows * 9 * Cin * Cout)
    bytes_accessed = int(flat.size * 2 + wk.size * 2 + bk.size * 4
                         + N * padded_rows * Cout * 2)

    # VMEM budget from the actual block sizes (double-buffered in/out blocks,
    # weights, bias, im2col scratch) with 2x headroom, capped at v7x's 64 MiB.
    block_bytes = (2 * (4 * flat_pad * Cin * 2) + 2 * (trw * Cout * 2)
                   + wk.size * 2 + bk.size * 4 + trw * 9 * Cin * 2)
    vmem_limit = int(min(max(2 * block_bytes, 8 * 2 ** 20), 64 * 2 ** 20))

    out = pl.pallas_call(
        kernel,
        out_shape=jax.ShapeDtypeStruct((N, padded_rows, Cout), jnp.bfloat16),
        grid=(N, r_tiles),
        in_specs=[
            # whole per-image phase tensor stays VMEM-resident across the
            # row-tile axis (index map ignores r).
            pl.BlockSpec((1, 4, flat_pad, Cin), lambda n, r: (n, 0, 0, 0)),
            pl.BlockSpec((9 * Cin, Cout), lambda n, r: (0, 0)),
            pl.BlockSpec((1, Cout), lambda n, r: (0, 0)),
        ],
        out_specs=pl.BlockSpec((1, trw, Cout), lambda n, r: (n, r, 0)),
        scratch_shapes=[pltpu.VMEM((trw, 9 * Cin), jnp.bfloat16)],
        compiler_params=pltpu.CompilerParams(
            dimension_semantics=("parallel", "parallel"),
            vmem_limit_bytes=vmem_limit),
        cost_estimate=pl.CostEstimate(flops=flops, transcendentals=0,
                                      bytes_accessed=bytes_accessed),
    )(flat, wk, bk)

    # drop the padded rows and the halo column; keep NHWC, bf16.
    out = out[:, :out_rows, :].reshape(N, Ho, Wo1, Cout)[:, :, :Wo, :]
    return out


# ----------------------------------------------------------------------------
# BaseEncoder forward
# ----------------------------------------------------------------------------
def init_backbone_params(key, in_channels=3, widths=(8, 16, 32)):
    params = []
    cin = in_channels
    for cout in widths:
        key, kw, kb = jax.random.split(key, 3)
        w = jax.random.normal(kw, (3, 3, cin, cout), jnp.float32) * 0.1
        b = jax.random.normal(kb, (cout,), jnp.float32) * 0.1
        params.append((w, b))
        cin = cout
    return params


def base_encoder_forward(x_nchw, params):
    """BaseEncoder.forward: run stages, features.insert(0, x).

    Accepts a torch-convention NCHW input; features are returned in NHWC
    (channels-last, bf16), the layout/precision the kernels compute in, so no
    per-feature NCHW transposes or f32 writebacks are paid.
    """
    x = jnp.transpose(x_nchw, (0, 2, 3, 1))   # single entry transpose
    features = []
    for (w, b) in params:
        x = conv3x3_s2_relu(x, w, b)
        features.insert(0, x)                 # deepest feature first
    return features


def _reference_forward(x_nchw, params):
    """Pure-XLA reference mirroring the kernel's bf16-in / f32-acc / bf16-out."""
    x = jnp.transpose(x_nchw, (0, 2, 3, 1)).astype(jnp.bfloat16)
    feats = []
    for (w, b) in params:
        y = jax.lax.conv_general_dilated(
            x, w.astype(jnp.bfloat16),
            window_strides=(2, 2), padding=((1, 1), (1, 1)),
            dimension_numbers=("NHWC", "HWIO", "NHWC"),
            preferred_element_type=jnp.float32)
        x = jnp.maximum(y + b[None, None, None, :], 0.0).astype(jnp.bfloat16)
        feats.insert(0, x)
    return feats


if __name__ == "__main__":
    key = jax.random.PRNGKey(0)
    key, kx = jax.random.split(key)

    # Torch-style NCHW input for a small vision backbone.
    x = jax.random.normal(kx, (2, 3, 16, 16), jnp.float32)
    params = init_backbone_params(key, in_channels=3, widths=(8, 16, 32))

    feats = jax.jit(base_encoder_forward)(x, params)
    feats = [jax.block_until_ready(f) for f in feats]

    # Deepest feature first (reverse stage order), NHWC layout.
    expected = [(2, 2, 2, 32), (2, 4, 4, 16), (2, 8, 8, 8)]
    assert [tuple(f.shape) for f in feats] == expected, \
        f"got {[tuple(f.shape) for f in feats]}"
    assert all(bool(jnp.all(jnp.isfinite(f.astype(jnp.float32)))) for f in feats)

    # Numerical check against a pure-XLA reference with the same precision
    # chain (bf16 inputs/weights, f32 accumulate + bias + ReLU, bf16 store).
    refs = _reference_forward(x, params)
    for f, r in zip(feats, refs):
        f32, r32 = f.astype(jnp.float32), r.astype(jnp.float32)
        err = float(jnp.max(jnp.abs(f32 - r32)))
        tol = 1e-2 + 2.0 ** -7 * float(jnp.max(jnp.abs(r32)))
        assert err < tol, f"kernel vs reference max abs err {err} (tol {tol})"

    print("KERNEL_OK")
</pallas_src>

<mosaic_0001>
module attributes {stable_mosaic.version = 11 : i64} {
  func.func @_conv_stage_kernel(%arg0: i32, %arg1: i32, %arg2: memref<1x4x90x3xbf16, #tpu.memory_space<vmem>>, %arg3: memref<27x8xbf16, #tpu.memory_space<vmem>>, %arg4: memref<1x8xf32, #tpu.memory_space<vmem>>, %arg5: memref<1x80x8xbf16, #tpu.memory_space<vmem>>, %arg6: memref<80x27xbf16, #tpu.memory_space<vmem>>) attributes {dimension_semantics = [#tpu.dimension_semantics<parallel>, #tpu.dimension_semantics<parallel>], iteration_bounds = array<i64: 2, 1>, scalar_prefetch = 0 : i64, scratch_operands = 1 : i64, tpu.core_type = #tpu.core_type<tc>, window_params = [{transform_indices = @transform_0, window_bounds = array<i64: 1, 4, 90, 3>}, {pipeline_mode = #tpu.pipeline_mode<synchronous>, transform_indices = @transform_1, window_bounds = array<i64: 27, 8>}, {pipeline_mode = #tpu.pipeline_mode<synchronous>, transform_indices = @transform_2, window_bounds = array<i64: 1, 8>}, {transform_indices = @transform_3, window_bounds = array<i64: 1, 80, 8>}]} {
    %c0 = arith.constant 0 : index
    %c0_0 = arith.constant 0 : index
    %c0_1 = arith.constant 0 : index
    %c0_2 = arith.constant 0 : index
    %0 = vector.load %arg2[%c0, %c0_0, %c0_1, %c0_2] : memref<1x4x90x3xbf16, #tpu.memory_space<vmem>>, vector<1x1x80x3xbf16>
    %1 = vector.shape_cast %0 : vector<1x1x80x3xbf16> to vector<80x3xbf16>
    %c0_3 = arith.constant 0 : index
    %c0_4 = arith.constant 0 : index
    %2 = vector.load %arg6[%c0_3, %c0_4] : memref<80x27xbf16, #tpu.memory_space<vmem>>, vector<80x3xbf16>
    tpu.vector_store %arg6[%c0_3, %c0_4], %1 {strides = array<i32>} : memref<80x27xbf16, #tpu.memory_space<vmem>>, vector<80x3xbf16>,
    %c0_5 = arith.constant 0 : index
    %c1 = arith.constant 1 : index
    %c0_6 = arith.constant 0 : index
    %c0_7 = arith.constant 0 : index
    %3 = vector.load %arg2[%c0_5, %c1, %c0_6, %c0_7] : memref<1x4x90x3xbf16, #tpu.memory_space<vmem>>, vector<1x1x80x3xbf16>
    %4 = vector.shape_cast %3 : vector<1x1x80x3xbf16> to vector<80x3xbf16>
    %c0_8 = arith.constant 0 : index
    %c3 = arith.constant 3 : index
    %5 = vector.load %arg6[%c0_8, %c3] : memref<80x27xbf16, #tpu.memory_space<vmem>>, vector<80x3xbf16>
    tpu.vector_store %arg6[%c0_8, %c3], %4 {strides = array<i32>} : memref<80x27xbf16, #tpu.memory_space<vmem>>, vector<80x3xbf16>,
    %c0_9 = arith.constant 0 : index
    %c0_10 = arith.constant 0 : index
    %c1_11 = arith.constant 1 : index
    %c0_12 = arith.constant 0 : index
    %6 = vector.load %arg2[%c0_9, %c0_10, %c1_11, %c0_12] : memref<1x4x90x3xbf16, #tpu.memory_space<vmem>>, vector<1x1x80x3xbf16>
    %7 = vector.shape_cast %6 : vector<1x1x80x3xbf16> to vector<80x3xbf16>
    %c0_13 = arith.constant 0 : index
    %c6 = arith.constant 6 : index
    %8 = vector.load %arg6[%c0_13, %c6] : memref<80x27xbf16, #tpu.memory_space<vmem>>, vector<80x3xbf16>
    tpu.vector_store %arg6[%c0_13, %c6], %7 {strides = array<i32>} : memref<80x27xbf16, #tpu.memory_space<vmem>>, vector<80x3xbf16>,
    %c0_14 = arith.constant 0 : index
    %c2 = arith.constant 2 : index
    %c0_15 = arith.constant 0 : index
    %c0_16 = arith.constant 0 : index
    %9 = vector.load %arg2[%c0_14, %c2, %c0_15, %c0_16] : memref<1x4x90x3xbf16, #tpu.memory_space<vmem>>, vector<1x1x80x3xbf16>
    %10 = vector.shape_cast %9 : vector<1x1x80x3xbf16> to vector<80x3xbf16>
    %c0_17 = arith.constant 0 : index
    %c9 = arith.constant 9 : index
    %11 = vector.load %arg6[%c0_17, %c9] : memref<80x27xbf16, #tpu.memory_space<vmem>>, vector<80x3xbf16>
    tpu.vector_store %arg6[%c0_17, %c9], %10 {strides = array<i32>} : memref<80x27xbf16, #tpu.memory_space<vmem>>, vector<80x3xbf16>,
    %c0_18 = arith.constant 0 : index
    %c3_19 = arith.constant 3 : index
    %c0_20 = arith.constant 0 : index
    %c0_21 = arith.constant 0 : index
    %12 = vector.load %arg2[%c0_18, %c3_19, %c0_20, %c0_21] : memref<1x4x90x3xbf16, #tpu.memory_space<vmem>>, vector<1x1x80x3xbf16>
    %13 = vector.shape_cast %12 : vector<1x1x80x3xbf16> to vector<80x3xbf16>
    %c0_22 = arith.constant 0 : index
    %c12 = arith.constant 12 : index
    %14 = vector.load %arg6[%c0_22, %c12] : memref<80x27xbf16, #tpu.memory_space<vmem>>, vector<80x3xbf16>
    tpu.vector_store %arg6[%c0_22, %c12], %13 {strides = array<i32>} : memref<80x27xbf16, #tpu.memory_space<vmem>>, vector<80x3xbf16>,
    %c0_23 = arith.constant 0 : index
    %c2_24 = arith.constant 2 : index
    %c1_25 = arith.constant 1 : index
    %c0_26 = arith.constant 0 : index
    %15 = vector.load %arg2[%c0_23, %c2_24, %c1_25, %c0_26] : memref<1x4x90x3xbf16, #tpu.memory_space<vmem>>, vector<1x1x80x3xbf16>
    %16 = vector.shape_cast %15 : vector<1x1x80x3xbf16> to vector<80x3xbf16>
    %c0_27 = arith.constant 0 : index
    %c15 = arith.constant 15 : index
    %17 = vector.load %arg6[%c0_27, %c15] : memref<80x27xbf16, #tpu.memory_space<vmem>>, vector<80x3xbf16>
    tpu.vector_store %arg6[%c0_27, %c15], %16 {strides = array<i32>} : memref<80x27xbf16, #tpu.memory_space<vmem>>, vector<80x3xbf16>,
    %c0_28 = arith.constant 0 : index
    %c0_29 = arith.constant 0 : index
    %c9_30 = arith.constant 9 : index
    %c0_31 = arith.constant 0 : index
    %18 = vector.load %arg2[%c0_28, %c0_29, %c9_30, %c0_31] : memref<1x4x90x3xbf16, #tpu.memory_space<vmem>>, vector<1x1x80x3xbf16>
    %19 = vector.shape_cast %18 : vector<1x1x80x3xbf16> to vector<80x3xbf16>
    %c0_32 = arith.constant 0 : index
    %c18 = arith.constant 18 : index
    %20 = vector.load %arg6[%c0_32, %c18] : memref<80x27xbf16, #tpu.memory_space<vmem>>, vector<80x3xbf16>
    tpu.vector_store %arg6[%c0_32, %c18], %19 {strides = array<i32>} : memref<80x27xbf16, #tpu.memory_space<vmem>>, vector<80x3xbf16>,
    %c0_33 = arith.constant 0 : index
    %c1_34 = arith.constant 1 : index
    %c9_35 = arith.constant 9 : index
    %c0_36 = arith.constant 0 : index
    %21 = vector.load %arg2[%c0_33, %c1_34, %c9_35, %c0_36] : memref<1x4x90x3xbf16, #tpu.memory_space<vmem>>, vector<1x1x80x3xbf16>
    %22 = vector.shape_cast %21 : vector<1x1x80x3xbf16> to vector<80x3xbf16>
    %c0_37 = arith.constant 0 : index
    %c21 = arith.constant 21 : index
    %23 = vector.load %arg6[%c0_37, %c21] : memref<80x27xbf16, #tpu.memory_space<vmem>>, vector<80x3xbf16>
    tpu.vector_store %arg6[%c0_37, %c21], %22 {strides = array<i32>} : memref<80x27xbf16, #tpu.memory_space<vmem>>, vector<80x3xbf16>,
    %c0_38 = arith.constant 0 : index
    %c0_39 = arith.constant 0 : index
    %c10 = arith.constant 10 : index
    %c0_40 = arith.constant 0 : index
    %24 = vector.load %arg2[%c0_38, %c0_39, %c10, %c0_40] : memref<1x4x90x3xbf16, #tpu.memory_space<vmem>>, vector<1x1x80x3xbf16>
    %25 = vector.shape_cast %24 : vector<1x1x80x3xbf16> to vector<80x3xbf16>
    %c0_41 = arith.constant 0 : index
    %c24 = arith.constant 24 : index
    %26 = vector.load %arg6[%c0_41, %c24] : memref<80x27xbf16, #tpu.memory_space<vmem>>, vector<80x3xbf16>
    tpu.vector_store %arg6[%c0_41, %c24], %25 {strides = array<i32>} : memref<80x27xbf16, #tpu.memory_space<vmem>>, vector<80x3xbf16>,
    %c0_42 = arith.constant 0 : index
    %c0_43 = arith.constant 0 : index
    %27 = vector.load %arg6[%c0_42, %c0_43] : memref<80x27xbf16, #tpu.memory_space<vmem>>, vector<80x27xbf16>
    %c0_44 = arith.constant 0 : index
    %c0_45 = arith.constant 0 : index
    %28 = vector.load %arg3[%c0_44, %c0_45] : memref<27x8xbf16, #tpu.memory_space<vmem>>, vector<27x8xbf16>
    %cst = arith.constant dense<0.000000e+00> : vector<80x8xf32>
    %29 = tpu.matmul %27, %28, %cst {dimension_numbers = #tpu.dot_dimension_numbers<[1], [0], [0], [1], [0, 0, 1, 1], [], []>} : vector<80x27xbf16>, vector<27x8xbf16>, vector<80x8xf32> -> vector<80x8xf32>
    %c0_46 = arith.constant 0 : index
    %c0_47 = arith.constant 0 : index
    %30 = vector.load %arg4[%c0_46, %c0_47] : memref<1x8xf32, #tpu.memory_space<vmem>>, vector<1x8xf32>
    %31 = vector.broadcast %30 : vector<1x8xf32> to vector<80x8xf32>
    %32 = arith.addf %29, %31 : vector<80x8xf32>
    %cst_48 = arith.constant 0.000000e+00 : f32
    %33 = vector.broadcast %cst_48 : f32 to vector<80x8xf32>
    %34 = arith.maximumf %32, %33 : vector<80x8xf32>
    %35 = arith.truncf %34 : vector<80x8xf32> to vector<80x8xbf16>
    %c0_49 = arith.constant 0 : index
    %c0_50 = arith.constant 0 : index
    %c0_51 = arith.constant 0 : index
    %36 = vector.load %arg5[%c0_49, %c0_50, %c0_51] : memref<1x80x8xbf16, #tpu.memory_space<vmem>>, vector<1x80x8xbf16>
    %37 = vector.shape_cast %36 : vector<1x80x8xbf16> to vector<80x8xbf16>
    %38 = vector.shape_cast %35 : vector<80x8xbf16> to vector<1x80x8xbf16>
    tpu.vector_store %arg5[%c0_49, %c0_50, %c0_51], %38 {strides = array<i32>} : memref<1x80x8xbf16, #tpu.memory_space<vmem>>, vector<1x80x8xbf16>,
    return
  }
  func.func @transform_0(%arg0: i32, %arg1: i32) -> (i32, i32, i32, i32) {
    %c0_i32 = arith.constant 0 : i32
    %c0_i32_0 = arith.constant 0 : i32
    %c0_i32_1 = arith.constant 0 : i32
    %c0_i32_2 = arith.constant 0 : i32
    return %arg0, %c0_i32, %c0_i32_0, %c0_i32_1 : i32, i32, i32, i32
  }
  func.func @transform_1(%arg0: i32, %arg1: i32) -> (i32, i32) {
    %c0_i32 = arith.constant 0 : i32
    %c0_i32_0 = arith.constant 0 : i32
    %c0_i32_1 = arith.constant 0 : i32
    return %c0_i32, %c0_i32_0 : i32, i32
  }
  func.func @transform_2(%arg0: i32, %arg1: i32) -> (i32, i32) {
    %c0_i32 = arith.constant 0 : i32
    %c0_i32_0 = arith.constant 0 : i32
    %c0_i32_1 = arith.constant 0 : i32
    return %c0_i32, %c0_i32_0 : i32, i32
  }
  func.func @transform_3(%arg0: i32, %arg1: i32) -> (i32, i32, i32) {
    %c0_i32 = arith.constant 0 : i32
    %c0_i32_0 = arith.constant 0 : i32
    return %arg0, %arg1, %c0_i32 : i32, i32, i32
  }
}

module attributes {stable_mosaic.version = 11 : i64} {
  func.func @_conv_stage_kernel(%arg0: i32, %arg1: i32, %arg2: memref<1x4x40x8xbf16, #tpu.memory_space<vmem>>, %arg3: memref<72x16xbf16, #tpu.memory_space<vmem>>, %arg4: memref<1x16xf32, #tpu.memory_space<vmem>>, %arg5: memref<1x32x16xbf16, #tpu.memory_space<vmem>>, %arg6: memref<32x72xbf16, #tpu.memory_space<vmem>>) attributes {dimension_semantics = [#tpu.dimension_semantics<parallel>, #tpu.dimension_semantics<parallel>], iteration_bounds = array<i64: 2, 1>, scalar_prefetch = 0 : i64, scratch_operands = 1 : i64, tpu.core_type = #tpu.core_type<tc>, window_params = [{transform_indices = @transform_0, window_bounds = array<i64: 1, 4, 40, 8>}, {pipeline_mode = #tpu.pipeline_mode<synchronous>, transform_indices = @transform_1, window_bounds = array<i64: 72, 16>}, {pipeline_mode = #tpu.pipeline_mode<synchronous>, transform_indices = @transform_2, window_bounds = array<i64: 1, 16>}, {transform_indices = @transform_3, window_bounds = array<i64: 1, 32, 16>}]} {
    %c0 = arith.constant 0 : index
    %c0_0 = arith.constant 0 : index
    %c0_1 = arith.constant 0 : index
    %c0_2 = arith.constant 0 : index
    %0 = vector.load %arg2[%c0, %c0_0, %c0_1, %c0_2] : memref<1x4x40x8xbf16, #tpu.memory_space<vmem>>, vector<1x1x32x8xbf16>
    %1 = vector.shape_cast %0 : vector<1x1x32x8xbf16> to vector<32x8xbf16>
    %c0_3 = arith.constant 0 : index
    %c0_4 = arith.constant 0 : index
    %2 = vector.load %arg6[%c0_3, %c0_4] : memref<32x72xbf16, #tpu.memory_space<vmem>>, vector<32x8xbf16>
    tpu.vector_store %arg6[%c0_3, %c0_4], %1 {strides = array<i32>} : memref<32x72xbf16, #tpu.memory_space<vmem>>, vector<32x8xbf16>,
    %c0_5 = arith.constant 0 : index
    %c1 = arith.constant 1 : index
    %c0_6 = arith.constant 0 : index
    %c0_7 = arith.constant 0 : index
    %3 = vector.load %arg2[%c0_5, %c1, %c0_6, %c0_7] : memref<1x4x40x8xbf16, #tpu.memory_space<vmem>>, vector<1x1x32x8xbf16>
    %4 = vector.shape_cast %3 : vector<1x1x32x8xbf16> to vector<32x8xbf16>
    %c0_8 = arith.constant 0 : index
    %c8 = arith.constant 8 : index
    %5 = vector.load %arg6[%c0_8, %c8] : memref<32x72xbf16, #tpu.memory_space<vmem>>, vector<32x8xbf16>
    tpu.vector_store %arg6[%c0_8, %c8], %4 {strides = array<i32>} : memref<32x72xbf16, #tpu.memory_space<vmem>>, vector<32x8xbf16>,
    %c0_9 = arith.constant 0 : index
    %c0_10 = arith.constant 0 : index
    %c1_11 = arith.constant 1 : index
    %c0_12 = arith.constant 0 : index
    %6 = vector.load %arg2[%c0_9, %c0_10, %c1_11, %c0_12] : memref<1x4x40x8xbf16, #tpu.memory_space<vmem>>, vector<1x1x32x8xbf16>
    %7 = vector.shape_cast %6 : vector<1x1x32x8xbf16> to vector<32x8xbf16>
    %c0_13 = arith.constant 0 : index
    %c16 = arith.constant 16 : index
    %8 = vector.load %arg6[%c0_13, %c16] : memref<32x72xbf16, #tpu.memory_space<vmem>>, vector<32x8xbf16>
    tpu.vector_store %arg6[%c0_13, %c16], %7 {strides = array<i32>} : memref<32x72xbf16, #tpu.memory_space<vmem>>, vector<32x8xbf16>,
    %c0_14 = arith.constant 0 : index
    %c2 = arith.constant 2 : index
    %c0_15 = arith.constant 0 : index
    %c0_16 = arith.constant 0 : index
    %9 = vector.load %arg2[%c0_14, %c2, %c0_15, %c0_16] : memref<1x4x40x8xbf16, #tpu.memory_space<vmem>>, vector<1x1x32x8xbf16>
    %10 = vector.shape_cast %9 : vector<1x1x32x8xbf16> to vector<32x8xbf16>
    %c0_17 = arith.constant 0 : index
    %c24 = arith.constant 24 : index
    %11 = vector.load %arg6[%c0_17, %c24] : memref<32x72xbf16, #tpu.memory_space<vmem>>, vector<32x8xbf16>
    tpu.vector_store %arg6[%c0_17, %c24], %10 {strides = array<i32>} : memref<32x72xbf16, #tpu.memory_space<vmem>>, vector<32x8xbf16>,
    %c0_18 = arith.constant 0 : index
    %c3 = arith.constant 3 : index
    %c0_19 = arith.constant 0 : index
    %c0_20 = arith.constant 0 : index
    %12 = vector.load %arg2[%c0_18, %c3, %c0_19, %c0_20] : memref<1x4x40x8xbf16, #tpu.memory_space<vmem>>, vector<1x1x32x8xbf16>
    %13 = vector.shape_cast %12 : vector<1x1x32x8xbf16> to vector<32x8xbf16>
    %c0_21 = arith.constant 0 : index
    %c32 = arith.constant 32 : index
    %14 = vector.load %arg6[%c0_21, %c32] : memref<32x72xbf16, #tpu.memory_space<vmem>>, vector<32x8xbf16>
    tpu.vector_store %arg6[%c0_21, %c32], %13 {strides = array<i32>} : memref<32x72xbf16, #tpu.memory_space<vmem>>, vector<32x8xbf16>,
    %c0_22 = arith.constant 0 : index
    %c2_23 = arith.constant 2 : index
    %c1_24 = arith.constant 1 : index
    %c0_25 = arith.constant 0 : index
    %15 = vector.load %arg2[%c0_22, %c2_23, %c1_24, %c0_25] : memref<1x4x40x8xbf16, #tpu.memory_space<vmem>>, vector<1x1x32x8xbf16>
    %16 = vector.shape_cast %15 : vector<1x1x32x8xbf16> to vector<32x8xbf16>
    %c0_26 = arith.constant 0 : index
    %c40 = arith.constant 40 : index
    %17 = vector.load %arg6[%c0_26, %c40] : memref<32x72xbf16, #tpu.memory_space<vmem>>, vector<32x8xbf16>
    tpu.vector_store %arg6[%c0_26, %c40], %16 {strides = array<i32>} : memref<32x72xbf16, #tpu.memory_space<vmem>>, vector<32x8xbf16>,
    %c0_27 = arith.constant 0 : index
    %c0_28 = arith.constant 0 : index
    %c5 = arith.constant 5 : index
    %c0_29 = arith.constant 0 : index
    %18 = vector.load %arg2[%c0_27, %c0_28, %c5, %c0_29] : memref<1x4x40x8xbf16, #tpu.memory_space<vmem>>, vector<1x1x32x8xbf16>
    %19 = vector.shape_cast %18 : vector<1x1x32x8xbf16> to vector<32x8xbf16>
    %c0_30 = arith.constant 0 : index
    %c48 = arith.constant 48 : index
    %20 = vector.load %arg6[%c0_30, %c48] : memref<32x72xbf16, #tpu.memory_space<vmem>>, vector<32x8xbf16>
    tpu.vector_store %arg6[%c0_30, %c48], %19 {strides = array<i32>} : memref<32x72xbf16, #tpu.memory_space<vmem>>, vector<32x8xbf16>,
    %c0_31 = arith.constant 0 : index
    %c1_32 = arith.constant 1 : index
    %c5_33 = arith.constant 5 : index
    %c0_34 = arith.constant 0 : index
    %21 = vector.load %arg2[%c0_31, %c1_32, %c5_33, %c0_34] : memref<1x4x40x8xbf16, #tpu.memory_space<vmem>>, vector<1x1x32x8xbf16>
    %22 = vector.shape_cast %21 : vector<1x1x32x8xbf16> to vector<32x8xbf16>
    %c0_35 = arith.constant 0 : index
    %c56 = arith.constant 56 : index
    %23 = vector.load %arg6[%c0_35, %c56] : memref<32x72xbf16, #tpu.memory_space<vmem>>, vector<32x8xbf16>
    tpu.vector_store %arg6[%c0_35, %c56], %22 {strides = array<i32>} : memref<32x72xbf16, #tpu.memory_space<vmem>>, vector<32x8xbf16>,
    %c0_36 = arith.constant 0 : index
    %c0_37 = arith.constant 0 : index
    %c6 = arith.constant 6 : index
    %c0_38 = arith.constant 0 : index
    %24 = vector.load %arg2[%c0_36, %c0_37, %c6, %c0_38] : memref<1x4x40x8xbf16, #tpu.memory_space<vmem>>, vector<1x1x32x8xbf16>
    %25 = vector.shape_cast %24 : vector<1x1x32x8xbf16> to vector<32x8xbf16>
    %c0_39 = arith.constant 0 : index
    %c64 = arith.constant 64 : index
    %26 = vector.load %arg6[%c0_39, %c64] : memref<32x72xbf16, #tpu.memory_space<vmem>>, vector<32x8xbf16>
    tpu.vector_store %arg6[%c0_39, %c64], %25 {strides = array<i32>} : memref<32x72xbf16, #tpu.memory_space<vmem>>, vector<32x8xbf16>,
    %c0_40 = arith.constant 0 : index
    %c0_41 = arith.constant 0 : index
    %27 = vector.load %arg6[%c0_40, %c0_41] : memref<32x72xbf16, #tpu.memory_space<vmem>>, vector<32x72xbf16>
    %c0_42 = arith.constant 0 : index
    %c0_43 = arith.constant 0 : index
    %28 = vector.load %arg3[%c0_42, %c0_43] : memref<72x16xbf16, #tpu.memory_space<vmem>>, vector<72x16xbf16>
    %cst = arith.constant dense<0.000000e+00> : vector<32x16xf32>
    %29 = tpu.matmul %27, %28, %cst {dimension_numbers = #tpu.dot_dimension_numbers<[1], [0], [0], [1], [0, 0, 1, 1], [], []>} : vector<32x72xbf16>, vector<72x16xbf16>, vector<32x16xf32> -> vector<32x16xf32>
    %c0_44 = arith.constant 0 : index
    %c0_45 = arith.constant 0 : index
    %30 = vector.load %arg4[%c0_44, %c0_45] : memref<1x16xf32, #tpu.memory_space<vmem>>, vector<1x16xf32>
    %31 = vector.broadcast %30 : vector<1x16xf32> to vector<32x16xf32>
    %32 = arith.addf %29, %31 : vector<32x16xf32>
    %cst_46 = arith.constant 0.000000e+00 : f32
    %33 = vector.broadcast %cst_46 : f32 to vector<32x16xf32>
    %34 = arith.maximumf %32, %33 : vector<32x16xf32>
    %35 = arith.truncf %34 : vector<32x16xf32> to vector<32x16xbf16>
    %c0_47 = arith.constant 0 : index
    %c0_48 = arith.constant 0 : index
    %c0_49 = arith.constant 0 : index
    %36 = vector.load %arg5[%c0_47, %c0_48, %c0_49] : memref<1x32x16xbf16, #tpu.memory_space<vmem>>, vector<1x32x16xbf16>
    %37 = vector.shape_cast %36 : vector<1x32x16xbf16> to vector<32x16xbf16>
    %38 = vector.shape_cast %35 : vector<32x16xbf16> to vector<1x32x16xbf16>
    tpu.vector_store %arg5[%c0_47, %c0_48, %c0_49], %38 {strides = array<i32>} : memref<1x32x16xbf16, #tpu.memory_space<vmem>>, vector<1x32x16xbf16>,
    return
  }
  func.func @transform_0(%arg0: i32, %arg1: i32) -> (i32, i32, i32, i32) {
    %c0_i32 = arith.constant 0 : i32
    %c0_i32_0 = arith.constant 0 : i32
    %c0_i32_1 = arith.constant 0 : i32
    %c0_i32_2 = arith.constant 0 : i32
    return %arg0, %c0_i32, %c0_i32_0, %c0_i32_1 : i32, i32, i32, i32
  }
  func.func @transform_1(%arg0: i32, %arg1: i32) -> (i32, i32) {
    %c0_i32 = arith.constant 0 : i32
    %c0_i32_0 = arith.constant 0 : i32
    %c0_i32_1 = arith.constant 0 : i32
    return %c0_i32, %c0_i32_0 : i32, i32
  }
  func.func @transform_2(%arg0: i32, %arg1: i32) -> (i32, i32) {
    %c0_i32 = arith.constant 0 : i32
    %c0_i32_0 = arith.constant 0 : i32
    %c0_i32_1 = arith.constant 0 : i32
    return %c0_i32, %c0_i32_0 : i32, i32
  }
  func.func @transform_3(%arg0: i32, %arg1: i32) -> (i32, i32, i32) {
    %c0_i32 = arith.constant 0 : i32
    %c0_i32_0 = arith.constant 0 : i32
    return %arg0, %arg1, %c0_i32 : i32, i32, i32
  }
}

module attributes {stable_mosaic.version = 11 : i64} {
  func.func @_conv_stage_kernel(%arg0: i32, %arg1: i32, %arg2: memref<1x4x21x16xbf16, #tpu.memory_space<vmem>>, %arg3: memref<144x32xbf16, #tpu.memory_space<vmem>>, %arg4: memref<1x32xf32, #tpu.memory_space<vmem>>, %arg5: memref<1x16x32xbf16, #tpu.memory_space<vmem>>, %arg6: memref<16x144xbf16, #tpu.memory_space<vmem>>) attributes {dimension_semantics = [#tpu.dimension_semantics<parallel>, #tpu.dimension_semantics<parallel>], iteration_bounds = array<i64: 2, 1>, scalar_prefetch = 0 : i64, scratch_operands = 1 : i64, tpu.core_type = #tpu.core_type<tc>, window_params = [{transform_indices = @transform_0, window_bounds = array<i64: 1, 4, 21, 16>}, {pipeline_mode = #tpu.pipeline_mode<synchronous>, transform_indices = @transform_1, window_bounds = array<i64: 144, 32>}, {pipeline_mode = #tpu.pipeline_mode<synchronous>, transform_indices = @transform_2, window_bounds = array<i64: 1, 32>}, {transform_indices = @transform_3, window_bounds = array<i64: 1, 16, 32>}]} {
    %c0 = arith.constant 0 : index
    %c0_0 = arith.constant 0 : index
    %c0_1 = arith.constant 0 : index
    %c0_2 = arith.constant 0 : index
    %0 = vector.load %arg2[%c0, %c0_0, %c0_1, %c0_2] : memref<1x4x21x16xbf16, #tpu.memory_space<vmem>>, vector<1x1x16x16xbf16>
    %1 = vector.shape_cast %0 : vector<1x1x16x16xbf16> to vector<16x16xbf16>
    %c0_3 = arith.constant 0 : index
    %c0_4 = arith.constant 0 : index
    %2 = vector.load %arg6[%c0_3, %c0_4] : memref<16x144xbf16, #tpu.memory_space<vmem>>, vector<16x16xbf16>
    tpu.vector_store %arg6[%c0_3, %c0_4], %1 {strides = array<i32>} : memref<16x144xbf16, #tpu.memory_space<vmem>>, vector<16x16xbf16>,
    %c0_5 = arith.constant 0 : index
    %c1 = arith.constant 1 : index
    %c0_6 = arith.constant 0 : index
    %c0_7 = arith.constant 0 : index
    %3 = vector.load %arg2[%c0_5, %c1, %c0_6, %c0_7] : memref<1x4x21x16xbf16, #tpu.memory_space<vmem>>, vector<1x1x16x16xbf16>
    %4 = vector.shape_cast %3 : vector<1x1x16x16xbf16> to vector<16x16xbf16>
    %c0_8 = arith.constant 0 : index
    %c16 = arith.constant 16 : index
    %5 = vector.load %arg6[%c0_8, %c16] : memref<16x144xbf16, #tpu.memory_space<vmem>>, vector<16x16xbf16>
    tpu.vector_store %arg6[%c0_8, %c16], %4 {strides = array<i32>} : memref<16x144xbf16, #tpu.memory_space<vmem>>, vector<16x16xbf16>,
    %c0_9 = arith.constant 0 : index
    %c0_10 = arith.constant 0 : index
    %c1_11 = arith.constant 1 : index
    %c0_12 = arith.constant 0 : index
    %6 = vector.load %arg2[%c0_9, %c0_10, %c1_11, %c0_12] : memref<1x4x21x16xbf16, #tpu.memory_space<vmem>>, vector<1x1x16x16xbf16>
    %7 = vector.shape_cast %6 : vector<1x1x16x16xbf16> to vector<16x16xbf16>
    %c0_13 = arith.constant 0 : index
    %c32 = arith.constant 32 : index
    %8 = vector.load %arg6[%c0_13, %c32] : memref<16x144xbf16, #tpu.memory_space<vmem>>, vector<16x16xbf16>
    tpu.vector_store %arg6[%c0_13, %c32], %7 {strides = array<i32>} : memref<16x144xbf16, #tpu.memory_space<vmem>>, vector<16x16xbf16>,
    %c0_14 = arith.constant 0 : index
    %c2 = arith.constant 2 : index
    %c0_15 = arith.constant 0 : index
    %c0_16 = arith.constant 0 : index
    %9 = vector.load %arg2[%c0_14, %c2, %c0_15, %c0_16] : memref<1x4x21x16xbf16, #tpu.memory_space<vmem>>, vector<1x1x16x16xbf16>
    %10 = vector.shape_cast %9 : vector<1x1x16x16xbf16> to vector<16x16xbf16>
    %c0_17 = arith.constant 0 : index
    %c48 = arith.constant 48 : index
    %11 = vector.load %arg6[%c0_17, %c48] : memref<16x144xbf16, #tpu.memory_space<vmem>>, vector<16x16xbf16>
    tpu.vector_store %arg6[%c0_17, %c48], %10 {strides = array<i32>} : memref<16x144xbf16, #tpu.memory_space<vmem>>, vector<16x16xbf16>,
    %c0_18 = arith.constant 0 : index
    %c3 = arith.constant 3 : index
    %c0_19 = arith.constant 0 : index
    %c0_20 = arith.constant 0 : index
    %12 = vector.load %arg2[%c0_18, %c3, %c0_19, %c0_20] : memref<1x4x21x16xbf16, #tpu.memory_space<vmem>>, vector<1x1x16x16xbf16>
    %13 = vector.shape_cast %12 : vector<1x1x16x16xbf16> to vector<16x16xbf16>
    %c0_21 = arith.constant 0 : index
    %c64 = arith.constant 64 : index
    %14 = vector.load %arg6[%c0_21, %c64] : memref<16x144xbf16, #tpu.memory_space<vmem>>, vector<16x16xbf16>
    tpu.vector_store %arg6[%c0_21, %c64], %13 {strides = array<i32>} : memref<16x144xbf16, #tpu.memory_space<vmem>>, vector<16x16xbf16>,
    %c0_22 = arith.constant 0 : index
    %c2_23 = arith.constant 2 : index
    %c1_24 = arith.constant 1 : index
    %c0_25 = arith.constant 0 : index
    %15 = vector.load %arg2[%c0_22, %c2_23, %c1_24, %c0_25] : memref<1x4x21x16xbf16, #tpu.memory_space<vmem>>, vector<1x1x16x16xbf16>
    %16 = vector.shape_cast %15 : vector<1x1x16x16xbf16> to vector<16x16xbf16>
    %c0_26 = arith.constant 0 : index
    %c80 = arith.constant 80 : index
    %17 = vector.load %arg6[%c0_26, %c80] : memref<16x144xbf16, #tpu.memory_space<vmem>>, vector<16x16xbf16>
    tpu.vector_store %arg6[%c0_26, %c80], %16 {strides = array<i32>} : memref<16x144xbf16, #tpu.memory_space<vmem>>, vector<16x16xbf16>,
    %c0_27 = arith.constant 0 : index
    %c0_28 = arith.constant 0 : index
    %c3_29 = arith.constant 3 : index
    %c0_30 = arith.constant 0 : index
    %18 = vector.load %arg2[%c0_27, %c0_28, %c3_29, %c0_30] : memref<1x4x21x16xbf16, #tpu.memory_space<vmem>>, vector<1x1x16x16xbf16>
    %19 = vector.shape_cast %18 : vector<1x1x16x16xbf16> to vector<16x16xbf16>
    %c0_31 = arith.constant 0 : index
    %c96 = arith.constant 96 : index
    %20 = vector.load %arg6[%c0_31, %c96] : memref<16x144xbf16, #tpu.memory_space<vmem>>, vector<16x16xbf16>
    tpu.vector_store %arg6[%c0_31, %c96], %19 {strides = array<i32>} : memref<16x144xbf16, #tpu.memory_space<vmem>>, vector<16x16xbf16>,
    %c0_32 = arith.constant 0 : index
    %c1_33 = arith.constant 1 : index
    %c3_34 = arith.constant 3 : index
    %c0_35 = arith.constant 0 : index
    %21 = vector.load %arg2[%c0_32, %c1_33, %c3_34, %c0_35] : memref<1x4x21x16xbf16, #tpu.memory_space<vmem>>, vector<1x1x16x16xbf16>
    %22 = vector.shape_cast %21 : vector<1x1x16x16xbf16> to vector<16x16xbf16>
    %c0_36 = arith.constant 0 : index
    %c112 = arith.constant 112 : index
    %23 = vector.load %arg6[%c0_36, %c112] : memref<16x144xbf16, #tpu.memory_space<vmem>>, vector<16x16xbf16>
    tpu.vector_store %arg6[%c0_36, %c112], %22 {strides = array<i32>} : memref<16x144xbf16, #tpu.memory_space<vmem>>, vector<16x16xbf16>,
    %c0_37 = arith.constant 0 : index
    %c0_38 = arith.constant 0 : index
    %c4 = arith.constant 4 : index
    %c0_39 = arith.constant 0 : index
    %24 = vector.load %arg2[%c0_37, %c0_38, %c4, %c0_39] : memref<1x4x21x16xbf16, #tpu.memory_space<vmem>>, vector<1x1x16x16xbf16>
    %25 = vector.shape_cast %24 : vector<1x1x16x16xbf16> to vector<16x16xbf16>
    %c0_40 = arith.constant 0 : index
    %c128 = arith.constant 128 : index
    %26 = vector.load %arg6[%c0_40, %c128] : memref<16x144xbf16, #tpu.memory_space<vmem>>, vector<16x16xbf16>
    tpu.vector_store %arg6[%c0_40, %c128], %25 {strides = array<i32>} : memref<16x144xbf16, #tpu.memory_space<vmem>>, vector<16x16xbf16>,
    %c0_41 = arith.constant 0 : index
    %c0_42 = arith.constant 0 : index
    %27 = vector.load %arg6[%c0_41, %c0_42] : memref<16x144xbf16, #tpu.memory_space<vmem>>, vector<16x144xbf16>
    %c0_43 = arith.constant 0 : index
    %c0_44 = arith.constant 0 : index
    %28 = vector.load %arg3[%c0_43, %c0_44] : memref<144x32xbf16, #tpu.memory_space<vmem>>, vector<144x32xbf16>
    %cst = arith.constant dense<0.000000e+00> : vector<16x32xf32>
    %29 = tpu.matmul %27, %28, %cst {dimension_numbers = #tpu.dot_dimension_numbers<[1], [0], [0], [1], [0, 0, 1, 1], [], []>} : vector<16x144xbf16>, vector<144x32xbf16>, vector<16x32xf32> -> vector<16x32xf32>
    %c0_45 = arith.constant 0 : index
    %c0_46 = arith.constant 0 : index
    %30 = vector.load %arg4[%c0_45, %c0_46] : memref<1x32xf32, #tpu.memory_space<vmem>>, vector<1x32xf32>
    %31 = vector.broadcast %30 : vector<1x32xf32> to vector<16x32xf32>
    %32 = arith.addf %29, %31 : vector<16x32xf32>
    %cst_47 = arith.constant 0.000000e+00 : f32
    %33 = vector.broadcast %cst_47 : f32 to vector<16x32xf32>
    %34 = arith.maximumf %32, %33 : vector<16x32xf32>
    %35 = arith.truncf %34 : vector<16x32xf32> to vector<16x32xbf16>
    %c0_48 = arith.constant 0 : index
    %c0_49 = arith.constant 0 : index
    %c0_50 = arith.constant 0 : index
    %36 = vector.load %arg5[%c0_48, %c0_49, %c0_50] : memref<1x16x32xbf16, #tpu.memory_space<vmem>>, vector<1x16x32xbf16>
    %37 = vector.shape_cast %36 : vector<1x16x32xbf16> to vector<16x32xbf16>
    %38 = vector.shape_cast %35 : vector<16x32xbf16> to vector<1x16x32xbf16>
    tpu.vector_store %arg5[%c0_48, %c0_49, %c0_50], %38 {strides = array<i32>} : memref<1x16x32xbf16, #tpu.memory_space<vmem>>, vector<1x16x32xbf16>,
    return
  }
  func.func @transform_0(%arg0: i32, %arg1: i32) -> (i32, i32, i32, i32) {
    %c0_i32 = arith.constant 0 : i32
    %c0_i32_0 = arith.constant 0 : i32
    %c0_i32_1 = arith.constant 0 : i32
    %c0_i32_2 = arith.constant 0 : i32
    return %arg0, %c0_i32, %c0_i32_0, %c0_i32_1 : i32, i32, i32, i32
  }
  func.func @transform_1(%arg0: i32, %arg1: i32) -> (i32, i32) {
    %c0_i32 = arith.constant 0 : i32
    %c0_i32_0 = arith.constant 0 : i32
    %c0_i32_1 = arith.constant 0 : i32
    return %c0_i32, %c0_i32_0 : i32, i32
  }
  func.func @transform_2(%arg0: i32, %arg1: i32) -> (i32, i32) {
    %c0_i32 = arith.constant 0 : i32
    %c0_i32_0 = arith.constant 0 : i32
    %c0_i32_1 = arith.constant 0 : i32
    return %c0_i32, %c0_i32_0 : i32, i32
  }
  func.func @transform_3(%arg0: i32, %arg1: i32) -> (i32, i32, i32) {
    %c0_i32 = arith.constant 0 : i32
    %c0_i32_0 = arith.constant 0 : i32
    return %arg0, %arg1, %c0_i32 : i32, i32, i32
  }
}

</mosaic_0001>

<bundles_post_ra>
// kernel: base_encoder_forward.3
= control target key start
LH: loop header
LB: loop body
LE: loop exit
PB: predicated region body
PF: predicated region fallthrough
CT: control target
= control target key end

     0   :  { %s1484_s12 = smov 0   ;;  %s1486_s13 = smov 0   ;;  %s1861_s0 = inlined_call_operand.vmem [shape: bf16[2,4,90,3], index: 0, kind: input, shape index: {}]   ;;  %s1862_s1 = inlined_call_operand.vmem [shape: bf16[27,8], index: 1, kind: input, shape index: {}]   ;;  %s1863_s2 = inlined_call_operand.vmem [shape: f32[1,8], index: 2, kind: input, shape index: {}]   ;;  %s1864_s3 = inlined_call_operand.vmem [shape: bf16[2,80,8], index: 3, kind: output, shape index: {}]  }
   0x1   :  { %s1488_s14 = smov 0  }
   0x2 LB: > { %s25_s15 = sadd.s32 1, %s1447_s13  ;;  %p1170_p0 = scmp.ge.s32.totalorder %s1451_s14, 1  ;;  %s1451_s14 = sphi %s1488_s14, %s13_s14   ;;  %s1447_s13 = sphi %s1486_s13, %s1866_s13   ;;  %s1443_s12 = sphi %s1484_s12, %s1865_s12  }
   0x3   : > { %p27_p1 = scmp.ge.s32.totalorder %s25_s15, 2  ;;  %p151_p2 = scmp.lt.s32.totalorder %s1451_s14, 3 }
   0x5   : > { %s1868_s15 = smov (%p27_p1, %s25_s15), 0  ;;  %p152_p3 = pnand %p1170_p0, %p151_p2 }
   0x6   : > { %p179_p4 = scmp.lt.s32.totalorder (!%p152_p3), %s1443_s12, 1  ;;  %s1453_s20 = smov (!%p152_p3), 9   ;;  %vm868_vm0 = vcmask (!%p152_p3), 1046528   ;;  %vm337_vm1 = vsmask.f32 (!%p152_p3), 7424  ;;  %vm235_vm2 = vcmask (!%p152_p3), 23552  }
   0x7   : > { %155 = sbr.rel (%p152_p3) target bundleno = 440 (0x1b8), region = 32  ;;  %s1454_s21 = smov (!%p152_p3), 3   ;;  %vm944_vm3 = vcmask (!%p152_p3), 1044480   ;;  %vm945_vm4 = vcmask (!%p152_p3), 1045504   ;;  %vm1463_vm5 = vmmov (!%p152_p3), 0   ;;  %vm292_vm6 = vcmask (!%p152_p3), 48152  }
   0x8   : > { %s1455_s22 = smov (!%p152_p3), 12   ;;  %s1456_s23 = smov (!%p152_p3), 24   ;;  %vm397_vm7 = vcmask (!%p152_p3), 72752   ;;  %vm454_vm8 = vcmask (!%p152_p3), 97352   ;;  %vm511_vm9 = vcmask (!%p152_p3), 121952   ;;  %vm615_vm10 = vcmask (!%p152_p3), 146552  }
   0x9   : > { %s1457_s24 = smov (!%p152_p3), 6   ;;  %s1458_s25 = smov (!%p152_p3), 15   ;;  %vm719_vm11 = vcmask (!%p152_p3), 171152   ;;  %vm823_vm12 = vcmask (!%p152_p3), 195752   ;;  %vm895_vm13 = vcmask (!%p152_p3), 220352   ;;  %vm928_vm14 = vcmask (!%p152_p3), 220160  }
   0xa   : > { %s1459_s26 = smov (!%p152_p3), 18   ;;  %s1460_s27 = smov (!%p152_p3), 21   ;;  %vm1074_vm15 = vcmask (!%p152_p3), 60416  }
   0xe   : > { %s1870_s12 = smov (!%p179_p4, %s1443_s12), 1 }
   0xf   : > { %s1340_s16 = smul.u32 192, %s1870_s12 }
  0x10   : > { %s1341_s7 = smul.u32 40, %s1870_s12 }
  0x11   : > { %s1508_s19 = scalar_lea.vmem %s1861_s0, %s1340_s16 }
  0x12   : > { %v1377_v0 = vld [vmem:[%s1508_s19 + $0x60] sm:$0xff]   ;;  %v1378_v1 = vld [vmem:[%s1508_s19 + $0x30] sm:$0xff]   ;;  %v1380_v3 = vld [vmem:[%s1508_s19 + $0x38] sm:$0xff]   ;;  %s1830_s10 = scalar_lea.vmem %s1864_s3, %s1341_s7 }
  0x13   : > { %439 = vrot.lane.b32.xlu1 %v1377_v0, %s1453_s20  ;;  %v1379_v2 = vld [vmem:[%s1508_s19 + $0x90] sm:$0xff]   ;;  %277 = vrot.lane.b32.xlu0 %v1378_v1, %s1454_s21  ;;  %v1381_v4 = vld [vmem:[%s1508_s19 + $0x48] sm:$0xff]  }
  0x14   : > { %v1382_v5 = vld [vmem:[%s1508_s19] sm:$0xff]   ;;  %v1383_v6 = vld [vmem:[%s1508_s19 + $0x8] sm:$0xff]   ;;  %v1390_v28 = vld [vmem:[%s1508_s19 + $0x34] sm:$0xff]  }
  0x15   : > { %v339_v7 = vshrl.u32 %v1382_v5, 16  ;;  %v341_v8 = vshll.u32 %v1382_v5, 16  ;;  %v346_v9 = vshll.u32 %v1383_v6, 16  ;;  %v1522_v10 = vld [vmem:[%s1508_s19 + $0xc] sm:$0xff]   ;;  %v1384_v11 = vld [vmem:[%s1508_s19 + $0x4] sm:$0xfe]  }
  0x16   : > { %v870_v14 = vrot.slane %v1522_v10, 1  ;;  %v1386_v15 = vld [vmem:[%s1508_s19 + $0x60] sm:$0xff]   ;;  %v869_v16 = vrot.slane %v1384_v11, 1  ;;  %v1529_v17 = vld [vmem:[%s1508_s19 + $0x68] sm:$0xff]   ;;  %v350_v25 = vshrl.u32 %v1383_v6, 16  ;;  %v765_v35 = vshrl.u32 %v1390_v28, 16 }
  0x17   : > { %496 = vrot.lane.b32.xlu1 %v1379_v2, %s1455_s22  ;;  %279 = vrot.lane.b32.xlu0 %v1380_v3, %s1454_s21  ;;  %v343_v12 = vrot.slane %v341_v8, 1  ;;  %v348_v13 = vrot.slane %v346_v9, 1  ;;  %v557_v19 = vshrl.u32 %v1386_v15, 16  ;;  %v559_v20 = vshll.u32 %v1386_v15, 16  ;;  %v1388_v23 = vld [vmem:[%s1508_s19 + $0x4] sm:$0xff]   ;;  %v1537_v24 = vld [vmem:[%s1508_s19 + $0xc] sm:$0xff]  }
  0x18   : > { %v871_v21 = vsel %vm868_vm0, %v869_v16, %v870_v14  ;;  %v564_v22 = vshll.u32 %v1529_v17, 16  ;;  %v661_v30 = vshrl.u32 %v1388_v23, 16  ;;  %v663_v31 = vshll.u32 %v1388_v23, 16  ;;  %v1547_v34 = vld [vmem:[%s1508_s19 + $0x3c] sm:$0xff]   ;;  %v1560_v47 = vld [vmem:[%s1508_s19 + $0x10] sm:$0xff]   ;;  %v1396_v62 = vld [vmem:[%s1508_s19 + $0x68] sm:$0xff]  }
  0x19   : > { %v344_v18 = vor.u32 %v343_v12, %v339_v7  ;;  %v561_v27 = vrot.slane %v559_v20, 1  ;;  %v668_v32 = vshll.u32 %v1537_v24, 16  ;;  %v767_v36 = vshll.u32 %v1390_v28, 16  ;;  %v1392_v37 = vld [vmem:[%s1508_s19 + $0x18] sm:$0xff]   ;;  %v1557_v44 = vld [vmem:[%s1508_s19 + $0x20] sm:$0xff]   ;;  %v1593_v2 = vld [vmem:[%s1508_s19 + $0x70] sm:$0xff]  }
  0x1a   : > { %v1543_v29 = vrot.slane %v564_v22, 1  ;;  %v665_v38 = vrot.slane %v663_v31, 1  ;;  %v772_v42 = vshll.u32 %v1547_v34, 16  ;;  %v362_v45 = vshll.u32 %v1392_v37, 16  ;;  %v1395_v59 = vld [vmem:[%s1508_s19 + $0x78] sm:$0xff]   ;;  %v1588_v0 = vld [vmem:[%s1508_s19 + $0x80] sm:$0xff]  }
  0x1b   : > { %283 = vrot.lane.b32.xlu1 %v1381_v4, %s1454_s21  ;;  %v349_v26 = vsel %vm337_vm1, %v344_v18, %v348_v13  ;;  %v562_v33 = vor.u32 %v561_v27, %v557_v19  ;;  %v1550_v39 = vrot.slane %v668_v32, 1  ;;  %v769_v41 = vrot.slane %v767_v36, 1  ;;  %v1399_v63 = vld [vmem:[%s1508_s19 + $0x78] sm:$0xff]   ;;  %v1397_v4 = vld [vmem:[%s1508_s19 + $0xa8] sm:$0xff]  }
  0x1c   : > { %382 = vrot.lane.b32.xlu0 %v349_v26, %s1457_s24  ;;  %v666_v43 = vor.u32 %v665_v38, %v661_v30  ;;  %v366_v46 = vshrl.u32 %v1392_v37, 16  ;;  %v1562_v49 = vrot.slane %v772_v42, 1  ;;  %v352_v50 = vor.u32 %v350_v25, %v348_v13  ;;  %v1402_v8 = vld [vmem:[%s1508_s19 + $0x1c] sm:$0xff]   ;;  %v1602_v12 = vld [vmem:[%s1508_s19 + $0x24] sm:$0xff]   ;;  %v1614_v20 = vld [vmem:[%s1508_s19 + $0x14] sm:$0xff]  }
  0x1d   : > { %v567_v40 = vsel %vm337_vm1, %v562_v33, %v1543_v29  ;;  %v770_v48 = vor.u32 %v769_v41, %v765_v35  ;;  %v1566_v52 = vrot.slane %v362_v45, 1  ;;  %v370_v53 = vshll.u32 %v1557_v44, 16  ;;  %v1398_v9 = vld [vmem:[%s1508_s19 + $0x98] sm:$0xff]   ;;  %v1635_v35 = vld [vmem:[%s1508_s19 + $0x44] sm:$0xff]  }
  0x1e   : > { %v671_v51 = vsel %vm337_vm1, %v666_v43, %v1550_v39  ;;  %v354_v54 = vshll.u32 %v1560_v47, 16  ;;  %v568_v1 = vshrl.u32 %v1529_v17, 16  ;;  %v672_v3 = vshrl.u32 %v1537_v24, 16  ;;  %v1622_v25 = vld [vmem:[%s1508_s19 + $0x54] sm:$0xff]   ;;  %v1647_v41 = vld [vmem:[%s1508_s19 + $0x1c] sm:$0xff]  }
  0x1f   : > { %880 = vrot.lane.b32.xlu1 %v871_v21, %s1456_s23  ;;  %v775_v55 = vsel %vm337_vm1, %v770_v48, %v1562_v49  ;;  %v368_v56 = vor.u32 %v366_v46, %v1566_v52  ;;  %v1575_v57 = vrot.slane %v370_v53, 1  ;;  %v580_v5 = vshll.u32 %v1399_v63, 16  ;;  %v1405_v21 = vld [vmem:[%s1508_s19 + $0x4c] sm:$0xff]   ;;  %v1413_v53 = vld [vmem:[%s1508_s19 + $0x28] ss:$0 sps:$4 sm:$0x11]  }
  0x20   : > { %600 = vrot.lane.b32.xlu0 %v567_v40, %s1458_s25  ;;  %v1577_v58 = vrot.slane %v354_v54, 1  ;;  %v584_v6 = vshrl.u32 %v1399_v63, 16  ;;  %v588_v7 = vshll.u32 %v1588_v0, 16  ;;  %v572_v11 = vshll.u32 %v1593_v2, 16  ;;  %v1424_v10 = vld [vmem:[%s1508_s19 + $0x18] sm:$0xff]  }
  0x21   : > { %v373_v60 = vsel %vm337_vm1, %v368_v56, %v1575_v57  ;;  %v1605_v13 = vrot.slane %v580_v5, 1  ;;  %v684_v16 = vshll.u32 %v1402_v8, 16  ;;  %v688_v17 = vshrl.u32 %v1402_v8, 16  ;;  %v1412_v5 = vld [vmem:[%s1508_s19 + $0x40] sm:$0xff]   ;;  %239 = vst.msk [vmem:[#allocation2 + $0x18] sm:$0xff] %vm235_vm2, %v1424_v10 }
  0x22   : > { %v357_v61 = vsel %vm337_vm1, %v352_v50, %v1577_v58  ;;  %v1607_v15 = vrot.slane %v588_v7, 1  ;;  %v1610_v18 = vrot.slane %v572_v11, 1  ;;  %v692_v19 = vshll.u32 %v1602_v12, 16  ;;  %v1423_v7 = vld [vmem:[%s1508_s19 + $0x8] sm:$0xff]  }
  0x23   : > { %704 = vrot.lane.b32.xlu1 %v671_v51, %s1459_s26  ;;  %v586_v22 = vor.u32 %v584_v6, %v1605_v13  ;;  %v570_v23 = vor.u32 %v568_v1, %v1543_v29  ;;  %v1619_v24 = vrot.slane %v684_v16, 1  ;;  %v676_v26 = vshll.u32 %v1614_v20, 16  ;;  %v1662_v51 = vld [vmem:[%s1508_s19 + $0x14] sm:$0xff]   ;;  %v1421_v6 = vld [vmem:[%s1508_s19 + $0x2c] ss:$0 sps:$4 sm:$0x11]  }
  0x24   : > { %808 = vrot.lane.b32.xlu0 %v775_v55, %s1460_s27  ;;  %v776_v27 = vshrl.u32 %v1547_v34, 16  ;;  %v1627_v28 = vrot.slane %v692_v19, 1  ;;  %v788_v30 = vshll.u32 %v1405_v21, 16  ;;  %v792_v32 = vshrl.u32 %v1405_v21, 16  ;;  %237 = vst.msk [vmem:[#allocation2 + $0x8] sm:$0xff] %vm235_vm2, %v1423_v7  ;;  %v1427_v16 = vld [vmem:[%s1508_s19 + $0x20] sm:$0xff]  }
  0x25   : > { %v591_v31 = vsel %vm337_vm1, %v586_v22, %v1607_v15  ;;  %v690_v29 = vor.u32 %v688_v17, %v1619_v24  ;;  %v796_v33 = vshll.u32 %v1622_v25, 16  ;;  %v575_v34 = vsel %vm337_vm1, %v570_v23, %v1610_v18  ;;  %240 = vst.msk [vmem:[#allocation2 + $0x20] sm:$0xff] %vm235_vm2, %v1427_v16 }
  0x26   : > { %v674_v36 = vor.u32 %v672_v3, %v1550_v39  ;;  %v1640_v37 = vrot.slane %v676_v26, 1  ;;  %v1642_v38 = vrot.slane %v788_v30, 1  ;;  %v780_v40 = vshll.u32 %v1635_v35, 16  ;;  %v1409_v39 = vld [vmem:[%s1508_s19 + $0x24] sm:$0xff]   ;;  %v1411_v3 = vld [vmem:[%s1508_s19 + $0x50] sm:$0xff]  }
  0x27   : > { %388 = vrot.lane.b32.xlu1 %v373_v60, %s1457_s24  ;;  %v695_v42 = vsel %vm337_vm1, %v690_v29, %v1627_v28  ;;  %v1653_v45 = vrot.slane %v796_v33, 1  ;;  %v778_v48 = vor.u32 %v776_v27, %v1562_v49  ;;  %v874_v55 = vrot.slane %v1647_v41, 1  ;;  %v1428_v26 = vld [vmem:[%s1508_s19 + $0x10] sm:$0xff]   ;;  %v1419_v33 = vld [vmem:[%s1508_s19 + $0x2c] ss:$0 sps:$4 sm:$0x11]  }
  0x28   : > { %384 = vrot.lane.b32.xlu0 %v357_v61, %s1457_s24  ;;  %v794_v43 = vor.u32 %v792_v32, %v1642_v38  ;;  %v679_v46 = vsel %vm337_vm1, %v674_v36, %v1640_v37  ;;  %v1659_v50 = vrot.slane %v780_v40, 1  ;;  %v876_v56 = vrot.slane %v1409_v39, 1  ;;  %238 = vst.msk [vmem:[#allocation2 + $0x10] sm:$0xff] %vm235_vm2, %v1428_v26  ;;  %v1416_v36 = vld [vmem:[%s1508_s19 + $0xb0] sm:$0xff]  }
  0x29   : > { %v374_v61 = vshrl.u32 %v1557_v44, 16  ;;  %v358_v1 = vshrl.u32 %v1560_v47, 16  ;;  %v878_v47 = vrot.slane %v1421_v6, 1  ;;  %v1461_v19 = vmov 0.0  }
  0x2a   : > { %v799_v54 = vsel %vm337_vm1, %v794_v43, %v1653_v45  ;;  %v783_v49 = vsel %vm337_vm1, %v778_v48, %v1659_v50  ;;  %v877_v60 = vsel %vm868_vm0, %v874_v55, %v876_v56  ;;  %1312 = vmatprep.subr.bf16.mxu0 %v1461_v19  ;;  %v1462_v22 = vmov 65535   ;;  %1316 = vmatprep.mubr.msk.bf16.mxu0 %vm1463_vm5, %v1461_v19 }
  0x2b   : > { %445 = vrot.lane.b32.xlu1 %v1395_v59, %s1453_s20  ;;  %v872_v59 = vrot.slane %v1662_v51, 1  ;;  %v376_v44 = vor.u32 %v374_v61, %v1575_v57  ;;  %v1701_v11 = vsel %vm868_vm0, %v876_v56, %v878_v47  ;;  %v1425_v57 = vld [vmem:[%s1862_s1] sm:$0xff]   ;;  %v946_v23 = vsel %vm944_vm3, 4294967295, %v1462_v22  ;;  %1336 = vmatprep.subr.bf16.mxu1 %v1461_v19 }
  0x2c   : > { %441 = vrot.lane.b32.xlu0 %v1396_v62, %s1453_s20  ;;  %v378_v62 = vshll.u32 %v1413_v53, 16  ;;  %1313 = vmatpush3.bf16.msra.mxu0 %v1425_v57  ;;  %v947_v27 = vsel %vm945_vm4, %v946_v23, 0  ;;  %v592_v29 = vshrl.u32 %v1588_v0, 16  ;;  %v696_v40 = vshrl.u32 %v1602_v12, 16  ;;  %v1417_v0 = vld [vmem:[%s1508_s19 + $0xa0] sm:$0xff]  }
  0x2d   : > { %v873_v63 = vsel %vm868_vm0, %v870_v14, %v872_v59  ;;  %v360_v14 = vor.u32 %v358_v1, %v1577_v58  ;;  %v1426_v58 = vld [vmem:[%s1862_s1 + $0x8] sm:$0x3f]   ;;  %1314 = vmatprep.subr.bf16.mxu0 %v1461_v19  ;;  %1338 = vmatpush3.bf16.msra.mxu1 %v1425_v57  ;;  %v700_v39 = vshll.u32 %v1419_v33, 16  ;;  %v680_v48 = vshrl.u32 %v1614_v20, 16 }
  0x2e   : > { %v380_v8 = vrot.slane %v378_v62, 1  ;;  %v949_v30 = vand.u32 %v1426_v58, %v947_v27  ;;  %1337 = vmatprep.subr.bf16.mxu1 %v1461_v19  ;;  %1328 = vmatprep.mubr.msk.bf16.mxu1 %vm1463_vm5, %v1461_v19  ;;  %v698_v53 = vor.u32 %v696_v40, %v1627_v28  ;;  %v800_v56 = vshrl.u32 %v1622_v25, 16 }
  0x2f   : > { %502 = vrot.lane.b32.xlu1 %v1397_v4, %s1455_s22  ;;  %v1422_v4 = vld [vmem:[%s1508_s19] sm:$0xff]   ;;  %v365_v21 = vsel %vm337_vm1, %v360_v14, %v1566_v52 }
  0x30   : > { %498 = vrot.lane.b32.xlu0 %v1398_v9, %s1455_s22  ;;  %236 = vst.msk [vmem:[#allocation2] sm:$0xff] %vm235_vm2, %v1422_v4  ;;  %v1418_v9 = vld [vmem:[%s1508_s19 + $0x88] ss:$0 sps:$4 sm:$0x11]   ;;  %v381_v17 = vsel %vm337_vm1, %v376_v44, %v380_v8  ;;  %v1414_v52 = vld [vmem:[%s1508_s19 + $0x80] sm:$0xff]   ;;  %1315 = vmatpush3.bf16.msra.mxu0 %v949_v30  ;;  %v802_v28 = vor.u32 %v800_v56, %v1653_v45 }
  0x31   : > { %v596_v32 = vshll.u32 %v1418_v9, 16  ;;  %1339 = vmatpush3.bf16.msra.mxu1 %v949_v30 }
  0x33   : > { %606 = vrot.lane.b32.xlu1 %v591_v31, %s1458_s25  ;;  %v1415_v31 = vld [vmem:[%s1508_s19 + $0x70] sm:$0xff]   ;;  %v598_v43 = vrot.slane %v596_v32, 1 }
  0x34   : > { %602 = vrot.lane.b32.xlu0 %v575_v34, %s1458_s25  ;;  %v576_v34 = vshrl.u32 %v1593_v2, 16 }
  0x36   : > { %v578_v2 = vor.u32 %v576_v34, %v1610_v18  ;;  %v784_v18 = vshrl.u32 %v1635_v35, 16 }
  0x37   : > { %710 = vrot.lane.b32.xlu1 %v695_v42, %s1459_s26  ;;  %v594_v42 = vor.u32 %v592_v29, %v1607_v15 }
  0x38   : > { %706 = vrot.lane.b32.xlu0 %v679_v46, %s1459_s26  ;;  %v1420_v46 = vld [vmem:[%s1508_s19 + $0x5c] ss:$0 sps:$4 sm:$0x11]   ;;  %v583_v15 = vsel %vm337_vm1, %v578_v2, %v1605_v13  ;;  %v786_v62 = vor.u32 %v784_v18, %v1659_v50 }
  0x39   : > { %v599_v12 = vsel %vm337_vm1, %v594_v42, %v598_v43 }
  0x3a   : > { %v791_v35 = vsel %vm337_vm1, %v786_v62, %v1642_v38 }
  0x3b   : > { %814 = vrot.lane.b32.xlu1 %v799_v54, %s1460_s27  ;;  %v702_v54 = vrot.slane %v700_v39, 1 }
  0x3c   : > { %810 = vrot.lane.b32.xlu0 %v783_v49, %s1460_s27  ;;  %v804_v49 = vshll.u32 %v1420_v46, 16  ;;  %v1275_v46 = vld [vmem:[%s1863_s2] ss:$0 sm:$0xff] }
  0x3d   : > { %v703_v20 = vsel %vm337_vm1, %v698_v53, %v702_v54 }
  0x3e   : > { %v806_v61 = vrot.slane %v804_v49, 1 }
  0x3f   : > { %886 = vrot.lane.b32.xlu1 %v877_v60, %s1456_s23  ;;  %v682_v60 = vor.u32 %v680_v48, %v1640_v37 }
  0x40   : > { %882 = vrot.lane.b32.xlu0 %v873_v63, %s1456_s23  ;;  %v807_v13 = vsel %vm337_vm1, %v802_v28, %v806_v61 }
  0x41   : > { %v687_v25 = vsel %vm337_vm1, %v682_v60, %v1619_v24  ;;  %v875_v24 = vsel %vm868_vm0, %v872_v59, %v874_v55 }
  0x43   : > { %285 = vrot.lane.b32.xlu1 %v1411_v3, %s1454_s21 }
  0x44   : > { %281 = vrot.lane.b32.xlu0 %v1412_v5, %s1454_s21 }
  0x47   : > { %390 = vrot.lane.b32.xlu1 %v381_v17, %s1457_s24 }
  0x48   : > { %386 = vrot.lane.b32.xlu0 %v365_v21, %s1457_s24 }
  0x4b   : > { %447 = vrot.lane.b32.xlu1 %v1414_v52, %s1453_s20 }
  0x4c   : > { %443 = vrot.lane.b32.xlu0 %v1415_v31, %s1453_s20 }
  0x4f   : > { %504 = vrot.lane.b32.xlu1 %v1416_v36, %s1455_s22 }
  0x50   : > { %500 = vrot.lane.b32.xlu0 %v1417_v0, %s1455_s22 }
  0x53   : > { %608 = vrot.lane.b32.xlu1 %v599_v12, %s1458_s25 }
  0x54   : > { %604 = vrot.lane.b32.xlu0 %v583_v15, %s1458_s25 }
  0x57   : > { %712 = vrot.lane.b32.xlu1 %v703_v20, %s1459_s26 }
  0x58   : > { %708 = vrot.lane.b32.xlu0 %v687_v25, %s1459_s26 }
  0x5b   : > { %816 = vrot.lane.b32.xlu1 %v807_v13, %s1460_s27 }
  0x5c   : > { %812 = vrot.lane.b32.xlu0 %v791_v35, %s1460_s27 }
  0x5f   : > { %888 = vrot.lane.b32.xlu1 %v1701_v11, %s1456_s23 }
  0x60   : > { %884 = vrot.lane.b32.xlu0 %v875_v24, %s1456_s23 }
  0x85   : > { %v440_v37 = vpop.permute.xlu1 %439  ;;  %v278_v45 = vpop.permute.xlu0 %277 }
  0x86   : > { %293 = vst.msk [vmem:[#allocation2] sm:$0xff] %vm292_vm6, %v278_v45 }
  0x89   : > { %v497_v38 = vpop.permute.xlu1 %496  ;;  %v280_v50 = vpop.permute.xlu0 %279 }
  0x8a   : > { %294 = vst.msk [vmem:[#allocation2 + $0x8] sm:$0xff] %vm292_vm6, %v280_v50 }
  0x8d   : > { %v284_v63 = vpop.permute.xlu1 %283 }
  0x8e   : > { %296 = vst.msk [vmem:[#allocation2 + $0x18] sm:$0xff] %vm292_vm6, %v284_v63  ;;  %v383_v41 = vpop.permute.xlu0 %382 }
  0x8f   : > { %398 = vst.msk [vmem:[#allocation2] sm:$0xff] %vm397_vm7, %v383_v41 }
  0x90   : > { %455 = vst.msk [vmem:[#allocation2] sm:$0xff] %vm454_vm8, %v440_v37 }
  0x91   : > { %v881_v51 = vpop.permute.xlu1 %880  ;;  %512 = vst.msk [vmem:[#allocation2] sm:$0xff] %vm511_vm9, %v497_v38 }
  0x92   : > { %v601_v55 = vpop.permute.xlu0 %600 }
  0x93   : > { %616 = vst.msk [vmem:[#allocation2] sm:$0xff] %vm615_vm10, %v601_v55 }
  0x95   : > { %v705_v59 = vpop.permute.xlu1 %704 }
  0x96   : > { %720 = vst.msk [vmem:[#allocation2] sm:$0xff] %vm719_vm11, %v705_v59  ;;  %v809_v1 = vpop.permute.xlu0 %808 }
  0x97   : > { %824 = vst.msk [vmem:[#allocation2] sm:$0xff] %vm823_vm12, %v809_v1 }
  0x98   : > { %896 = vst.msk [vmem:[#allocation2] sm:$0xff] %vm895_vm13, %v881_v51 }
  0x99   : > { %v389_v3 = vpop.permute.xlu1 %388 }
  0x9a   : > { %401 = vst.msk [vmem:[#allocation2 + $0x18] sm:$0xff] %vm397_vm7, %v389_v3  ;;  %v385_v4 = vpop.permute.xlu0 %384 }
  0x9b   : > { %399 = vst.msk [vmem:[#allocation2 + $0x8] sm:$0xff] %vm397_vm7, %v385_v4 }
  0x9d   : > { %v446_v5 = vpop.permute.xlu1 %445 }
  0x9e   : > { %458 = vst.msk [vmem:[#allocation2 + $0x18] sm:$0xff] %vm454_vm8, %v446_v5  ;;  %v442_v6 = vpop.permute.xlu0 %441 }
  0x9f   : > { %456 = vst.msk [vmem:[#allocation2 + $0x8] sm:$0xff] %vm454_vm8, %v442_v6  ;;  %v901_v7 = vld [vmem:[#allocation2] sm:$0xff] }
  0xa0   : > { %1317 = vmatmul.mubr.msk.bf16.vlgmr.msra.gmra.mrb[0].mxu0 %vm928_vm14, %v901_v7 }
  0xa1   : > { %v503_v44 = vpop.permute.xlu1 %502  ;;  %1320 = vmatprep.mubr.msk.bf16.mxu0 %vm1463_vm5, %v1461_v19 }
  0xa2   : > { %515 = vst.msk [vmem:[#allocation2 + $0x18] sm:$0xff] %vm511_vm9, %v503_v44  ;;  %v499_v8 = vpop.permute.xlu0 %498 }
  0xa3   : > { %513 = vst.msk [vmem:[#allocation2 + $0x8] sm:$0xff] %vm511_vm9, %v499_v8 }
  0xa5   : > { %v607_v10 = vpop.permute.xlu1 %606 }
  0xa6   : > { %619 = vst.msk [vmem:[#allocation2 + $0x18] sm:$0xff] %vm615_vm10, %v607_v10  ;;  %v603_v14 = vpop.permute.xlu0 %602 }
  0xa7   : > { %617 = vst.msk [vmem:[#allocation2 + $0x8] sm:$0xff] %vm615_vm10, %v603_v14 }
  0xa9   : > { %v711_v47 = vpop.permute.xlu1 %710 }
  0xaa   : > { %723 = vst.msk [vmem:[#allocation2 + $0x18] sm:$0xff] %vm719_vm11, %v711_v47  ;;  %v707_v9 = vpop.permute.xlu0 %706 }
  0xab   : > { %721 = vst.msk [vmem:[#allocation2 + $0x8] sm:$0xff] %vm719_vm11, %v707_v9 }
  0xad   : > { %v815_v11 = vpop.permute.xlu1 %814 }
  0xae   : > { %827 = vst.msk [vmem:[#allocation2 + $0x18] sm:$0xff] %vm823_vm12, %v815_v11  ;;  %v811_v57 = vpop.permute.xlu0 %810 }
  0xaf   : > { %825 = vst.msk [vmem:[#allocation2 + $0x8] sm:$0xff] %vm823_vm12, %v811_v57 }
  0xb1   : > { %v887_v58 = vpop.permute.xlu1 %886 }
  0xb2   : > { %899 = vst.msk [vmem:[#allocation2 + $0x18] sm:$0xff] %vm895_vm13, %v887_v58  ;;  %v883_v16 = vpop.permute.xlu0 %882 }
  0xb3   : > { %897 = vst.msk [vmem:[#allocation2 + $0x8] sm:$0xff] %vm895_vm13, %v883_v16 }
  0xb5   : > { %v286_v17 = vpop.permute.xlu1 %285 }
  0xb6   : > { %297 = vst.msk [vmem:[#allocation2 + $0x20] sm:$0xff] %vm292_vm6, %v286_v17  ;;  %v282_v21 = vpop.permute.xlu0 %281 }
  0xb7   : > { %295 = vst.msk [vmem:[#allocation2 + $0x10] sm:$0xff] %vm292_vm6, %v282_v21 }
  0xb9   : > { %v391_v22 = vpop.permute.xlu1 %390  ;;  %v904_v23 = vld [vmem:[#allocation2 + $0x18] sm:$0xff] }
  0xba   : > { %402 = vst.msk [vmem:[#allocation2 + $0x20] sm:$0xff] %vm397_vm7, %v391_v22  ;;  %v387_v26 = vpop.permute.xlu0 %386  ;;  %v902_v27 = vld [vmem:[#allocation2 + $0x8] sm:$0xff]  ;;  %1329 = vmatmul.mubr.msk.bf16.vlgmr.msra.gmra.mrb[0].mxu1 %vm928_vm14, %v904_v23 }
  0xbb   : > { %400 = vst.msk [vmem:[#allocation2 + $0x10] sm:$0xff] %vm397_vm7, %v387_v26  ;;  %1321 = vmatmul.mubr.msk.bf16.gmra.mrb[4].mxu0 %vm928_vm14, %v902_v27  ;;  %1332 = vmatprep.mubr.msk.bf16.mxu1 %vm1463_vm5, %v1461_v19 }
  0xbc   : > { %1324 = vmatprep.mubr.msk.bf16.mxu0 %vm1463_vm5, %v1461_v19 }
  0xbd   : > { %v448_v52 = vpop.permute.xlu1 %447 }
  0xbe   : > { %459 = vst.msk [vmem:[#allocation2 + $0x20] sm:$0xff] %vm454_vm8, %v448_v52  ;;  %v444_v30 = vpop.permute.xlu0 %443 }
  0xbf   : > { %457 = vst.msk [vmem:[#allocation2 + $0x10] sm:$0xff] %vm454_vm8, %v444_v30 }
  0xc1   : > { %v505_v31 = vpop.permute.xlu1 %504 }
  0xc2   : > { %516 = vst.msk [vmem:[#allocation2 + $0x20] sm:$0xff] %vm511_vm9, %v505_v31  ;;  %v501_v29 = vpop.permute.xlu0 %500 }
  0xc3   : > { %514 = vst.msk [vmem:[#allocation2 + $0x10] sm:$0xff] %vm511_vm9, %v501_v29 }
  0xc5   : > { %v609_v32 = vpop.permute.xlu1 %608 }
  0xc6   : > { %620 = vst.msk [vmem:[#allocation2 + $0x20] sm:$0xff] %vm615_vm10, %v609_v32  ;;  %v605_v33 = vpop.permute.xlu0 %604 }
  0xc7   : > { %618 = vst.msk [vmem:[#allocation2 + $0x10] sm:$0xff] %vm615_vm10, %v605_v33 }
  0xc9   : > { %v713_v34 = vpop.permute.xlu1 %712 }
  0xca   : > { %724 = vst.msk [vmem:[#allocation2 + $0x20] sm:$0xff] %vm719_vm11, %v713_v34  ;;  %v709_v19 = vpop.permute.xlu0 %708 }
  0xcb   : > { %722 = vst.msk [vmem:[#allocation2 + $0x10] sm:$0xff] %vm719_vm11, %v709_v19 }
  0xcd   : > { %v817_v36 = vpop.permute.xlu1 %816 }
  0xce   : > { %828 = vst.msk [vmem:[#allocation2 + $0x20] sm:$0xff] %vm823_vm12, %v817_v36  ;;  %v813_v40 = vpop.permute.xlu0 %812 }
  0xcf   : > { %826 = vst.msk [vmem:[#allocation2 + $0x10] sm:$0xff] %vm823_vm12, %v813_v40 }
  0xd1   : > { %v889_v0 = vpop.permute.xlu1 %888 }
  0xd2   : > { %900 = vst.msk [vmem:[#allocation2 + $0x20] sm:$0xff] %vm895_vm13, %v889_v0  ;;  %v885_v42 = vpop.permute.xlu0 %884 }
  0xd3   : > { %898 = vst.msk [vmem:[#allocation2 + $0x10] sm:$0xff] %vm895_vm13, %v885_v42 }
  0xd9   : > { %v905_v43 = vld [vmem:[#allocation2 + $0x20] sm:$0xff] }
  0xda   : > { %v903_v39 = vld [vmem:[#allocation2 + $0x10] sm:$0xff]  ;;  %1333 = vmatmul.mubr.msk.bf16.gmra.mrb[4].mxu1 %vm928_vm14, %v905_v43 }
  0xdb   : > { %1325 = vmatmul.mubr.msk.bf16.gmra.mrb[8].mxu0 %vm928_vm14, %v903_v39 }
 0x173   : > { %v985_v2 = vpop.f32.mrb[0].mxu0 }
 0x174   : > { %v986_v48 = vadd.f32 %v1275_v46, %v985_v2  ;;  %v1318_v53 = vpop.f32.mrb[1].mxu0 }
 0x175   : > { %v988_v12 = vpop.f32.mrb[2].mxu0 }
 0x176   : > { %v1024_v54 = vmax.f32 %v986_v48, 0.0  ;;  %v989_v56 = vadd.f32 %v1275_v46, %v988_v12  ;;  %v1319_v49 = vpop.f32.mrb[3].mxu0 }
 0x178   : > { %v1295_v15 = vpack.c.bf16 %v1024_v54, %v1024_v54  ;;  %v1025_v60 = vmax.f32 %v989_v56, 0.0 }
 0x17a   : > { %1075 = vst.msk [vmem:[%s1830_s10] sm:$0xf] %vm1074_vm15, %v1295_v15  ;;  %v1296_v18 = vpack.c.bf16 %v1025_v60, %v1025_v60 }
 0x17c   : > { %1076 = vst.msk [vmem:[%s1830_s10 + $0x4] sm:$0xf] %vm1074_vm15, %v1296_v18 }
 0x18d   : > { %v1009_v20 = vpop.f32.mrb[0].mxu1 }
 0x18e   : > { %v993_v28 = vpop.f32.mrb[4].mxu0  ;;  %v1010_v61 = vadd.f32 %v1275_v46, %v1009_v20  ;;  %v1330_v25 = vpop.f32.mrb[1].mxu1 }
 0x18f   : > { %v994_v62 = vadd.f32 %v1275_v46, %v993_v28  ;;  %v1322_v13 = vpop.f32.mrb[5].mxu0  ;;  %v1012_v35 = vpop.f32.mrb[2].mxu1 }
 0x190   : > { %v1030_v24 = vmax.f32 %v1010_v61, 0.0  ;;  %v996_v37 = vpop.f32.mrb[6].mxu0  ;;  %v1013_v45 = vadd.f32 %v1275_v46, %v1012_v35  ;;  %v1331_v38 = vpop.f32.mrb[3].mxu1 }
 0x191   : > { %v1026_v50 = vmax.f32 %v994_v62, 0.0  ;;  %v997_v63 = vadd.f32 %v1275_v46, %v996_v37  ;;  %v1323_v41 = vpop.f32.mrb[7].mxu0 }
 0x192   : > { %v1301_v51 = vpack.c.bf16 %v1030_v24, %v1030_v24  ;;  %v1031_v55 = vmax.f32 %v1013_v45, 0.0 }
 0x193   : > { %v1297_v59 = vpack.c.bf16 %v1026_v50, %v1026_v50  ;;  %v1027_v1 = vmax.f32 %v997_v63, 0.0 }
 0x194   : > { %1081 = vst.msk [vmem:[%s1830_s10 + $0x18] sm:$0xf] %vm1074_vm15, %v1301_v51  ;;  %v1302_v3 = vpack.c.bf16 %v1031_v55, %v1031_v55 }
 0x195   : > { %1077 = vst.msk [vmem:[%s1830_s10 + $0x8] sm:$0xf] %vm1074_vm15, %v1297_v59  ;;  %v1298_v4 = vpack.c.bf16 %v1027_v1, %v1027_v1 }
 0x196   : > { %1082 = vst.msk [vmem:[%s1830_s10 + $0x1c] sm:$0xf] %vm1074_vm15, %v1302_v3 }
 0x197   : > { %1078 = vst.msk [vmem:[%s1830_s10 + $0xc] sm:$0xf] %vm1074_vm15, %v1298_v4 }
 0x1ad   : > { %v1017_v5 = vpop.f32.mrb[4].mxu1 }
 0x1ae   : > { %v1001_v6 = vpop.f32.mrb[8].mxu0  ;;  %v1018_v7 = vadd.f32 %v1275_v46, %v1017_v5  ;;  %v1334_v44 = vpop.f32.mrb[5].mxu1 }
 0x1af   : > { %v1002_v8 = vadd.f32 %v1275_v46, %v1001_v6  ;;  %v1326_v10 = vpop.f32.mrb[9].mxu0  ;;  %v1020_v14 = vpop.f32.mrb[6].mxu1 }
 0x1b0   : > { %v1032_v47 = vmax.f32 %v1018_v7, 0.0  ;;  %v1004_v9 = vpop.f32.mrb[10].mxu0  ;;  %v1021_v11 = vadd.f32 %v1275_v46, %v1020_v14  ;;  %v1335_v57 = vpop.f32.mrb[7].mxu1 }
 0x1b1   : > { %v1028_v58 = vmax.f32 %v1002_v8, 0.0  ;;  %v1005_v16 = vadd.f32 %v1275_v46, %v1004_v9  ;;  %v1327_v17 = vpop.f32.mrb[11].mxu0 }
 0x1b2   : > { %v1303_v21 = vpack.c.bf16 %v1032_v47, %v1032_v47  ;;  %v1033_v22 = vmax.f32 %v1021_v11, 0.0 }
 0x1b3   : > { %v1299_v23 = vpack.c.bf16 %v1028_v58, %v1028_v58  ;;  %v1029_v26 = vmax.f32 %v1005_v16, 0.0 }
 0x1b4   : > { %1083 = vst.msk [vmem:[%s1830_s10 + $0x20] sm:$0xf] %vm1074_vm15, %v1303_v21  ;;  %v1304_v27 = vpack.c.bf16 %v1033_v22, %v1033_v22 }
 0x1b5   : > { %1079 = vst.msk [vmem:[%s1830_s10 + $0x10] sm:$0xf] %vm1074_vm15, %v1299_v23  ;;  %v1300_v52 = vpack.c.bf16 %v1029_v26, %v1029_v26 }
 0x1b6   : > { %1084 = vst.msk [vmem:[%s1830_s10 + $0x24] sm:$0xf] %vm1074_vm15, %v1304_v27 }
 0x1b7   : > { %1080 = vst.msk [vmem:[%s1830_s10 + $0x14] sm:$0xf] %vm1074_vm15, %v1300_v52 }
 0x1b8 PF: > { %s13_s14 = sadd.s32 1, %s1451_s14   ;;  %s1865_s12 = smov %s1447_s13 }
 0x1b9   : > { %p10_p5 = scmp.ge.s32.totalorder %s13_s14, 4   ;;  %s1866_s13 = smov %s1868_s15 }
 0x1bb   :  { %12 = sbr.rel (!%p10_p5) target bundleno = 2 (0x2), region = 65 }

// kernel: base_encoder_forward.4
= control target key start
LH: loop header
LB: loop body
LE: loop exit
PB: predicated region body
PF: predicated region fallthrough
CT: control target
= control target key end

     0   :  { %s939_s12 = smov 0   ;;  %s941_s13 = smov 0   ;;  %s1033_s0 = inlined_call_operand.vmem [shape: bf16[2,4,40,8], index: 0, kind: input, shape index: {}]   ;;  %s1034_s1 = inlined_call_operand.vmem [shape: bf16[72,16], index: 1, kind: input, shape index: {}]   ;;  %s1035_s2 = inlined_call_operand.vmem [shape: f32[1,16], index: 2, kind: input, shape index: {}]   ;;  %s1036_s3 = inlined_call_operand.vmem [shape: bf16[2,32,16], index: 3, kind: output, shape index: {}]  }
   0x1   :  { %s943_s14 = smov 0  }
   0x2 LB: > { %s25_s15 = sadd.s32 1, %s905_s13  ;;  %p736_p0 = scmp.ge.s32.totalorder %s909_s14, 1  ;;  %s909_s14 = sphi %s943_s14, %s13_s14   ;;  %s905_s13 = sphi %s941_s13, %s1038_s13   ;;  %s901_s12 = sphi %s939_s12, %s1037_s12  }
   0x3   : > { %p27_p1 = scmp.ge.s32.totalorder %s25_s15, 2  ;;  %p151_p2 = scmp.lt.s32.totalorder %s909_s14, 3 }
   0x5   : > { %s1040_s15 = smov (%p27_p1, %s25_s15), 0  ;;  %p152_p3 = pnand %p736_p0, %p151_p2 }
   0x6   : > { %p179_p4 = scmp.lt.s32.totalorder (!%p152_p3), %s901_s12, 1  ;;  %s911_s20 = smov (!%p152_p3), 24   ;;  %vm256_vm0 = vsmask.f32 (!%p152_p3), 7424  ;;  %vm211_vm1 = vcmask (!%p152_p3), 64512   ;;  %vm506_vm3 = vcmask (!%p152_p3), 1044480  }
   0x7   : > { %155 = sbr.rel (%p152_p3) target bundleno = 394 (0x18a), region = 32  ;;  %s912_s21 = smov (!%p152_p3), 8   ;;  %vm399_vm2 = vsmask.f32 (!%p152_p3), 5376  ;;  %vm573_vm4 = vcmask (!%p152_p3), 1043456   ;;  %vm235_vm5 = vcmask (!%p152_p3), 130112  }
   0x8   : > { %s913_s22 = smov (!%p152_p3), 32   ;;  %s914_s23 = smov (!%p152_p3), 16   ;;  %vm283_vm6 = vcmask (!%p152_p3), 195712   ;;  %vm307_vm7 = vcmask (!%p152_p3), 261312   ;;  %vm331_vm8 = vcmask (!%p152_p3), 326912   ;;  %vm378_vm9 = vcmask (!%p152_p3), 392512  }
   0x9   : > { %s915_s24 = smov (!%p152_p3), 40   ;;  %s916_s25 = smov (!%p152_p3), 48   ;;  %vm432_vm10 = vcmask (!%p152_p3), 458112   ;;  %vm485_vm11 = vcmask (!%p152_p3), 523712   ;;  %vm518_vm12 = vcmask (!%p152_p3), 589312   ;;  %vm566_vm13 = vcmask (!%p152_p3), 588800  }
   0xa   : > { %s917_s30 = smov (!%p152_p3), 56   ;;  %s918_s6 = smov (!%p152_p3), 64   ;;  %vm646_vm14 = vcmask (!%p152_p3), 125952  }
   0xe   : > { %s1042_s12 = smov (!%p179_p4, %s901_s12), 1 }
   0xf   : > { %s826_s16 = smul.u32 80, %s1042_s12  ;;  %s799_s17 = sshll.u32 %s1042_s12, 4 }
  0x11   : > { %s963_s19 = scalar_lea.vmem %s1033_s0, %s826_s16 }
  0x12   : > { %v859_v0 = vld [vmem:[%s963_s19 + $0x30] sm:$0xff]   ;;  %v861_v2 = vld [vmem:[%s963_s19 + $0x44] sm:$0xff]   ;;  %v862_v3 = vld [vmem:[%s963_s19 + $0x1c] sm:$0xff]  }
  0x13   : > { %v860_v1 = vld [vmem:[%s963_s19 + $0x14] sm:$0xff]   ;;  %303 = vrot.lane.b32.xlu1 %v859_v0, %s911_s20  ;;  %v863_v4 = vld [vmem:[%s963_s19] sm:$0xff]   ;;  %v864_v5 = vld [vmem:[%s963_s19 + $0x8] sm:$0xff]  }
  0x14   : > { %229 = vrot.lane.b32.xlu0 %v860_v1, %s912_s21  ;;  %v865_v6 = vld [vmem:[%s963_s19 + $0x28] sm:$0xff]   ;;  %v258_v7 = vshrl.u32 %v863_v4, 16  ;;  %v260_v8 = vshll.u32 %v863_v4, 16  ;;  %v265_v9 = vshll.u32 %v864_v5, 16  ;;  %v269_v10 = vshrl.u32 %v864_v5, 16  ;;  %v867_v14 = vld [vmem:[%s963_s19 + $0x3c] sm:$0xff]  }
  0x15   : > { %v866_v11 = vld [vmem:[%s963_s19 + $0x10] ss:$0 sps:$4 sm:$0x11]   ;;  %v868_v16 = vld [vmem:[%s963_s19 + $0x28] sm:$0xff]   ;;  %v871_v31 = vld [vmem:[%s963_s19] sm:$0xfc]  }
  0x16   : > { %v262_v12 = vrot.slane %v260_v8, 1  ;;  %v267_v13 = vrot.slane %v265_v9, 1  ;;  %v273_v15 = vshll.u32 %v866_v11, 16  ;;  %v869_v19 = vld [vmem:[%s963_s19 + $0x30] sm:$0xff]   ;;  %v353_v21 = vshrl.u32 %v868_v16, 16  ;;  %v872_v32 = vld [vmem:[%s963_s19 + $0x8] sm:$0xff]  }
  0x17   : > { %327 = vrot.lane.b32.xlu1 %v861_v2, %s913_s22  ;;  %v355_v22 = vshll.u32 %v868_v16, 16  ;;  %v870_v23 = vld [vmem:[%s963_s19 + $0x38] ss:$0 sps:$4 sm:$0x11]   ;;  %v360_v25 = vshll.u32 %v869_v19, 16  ;;  %v364_v26 = vshrl.u32 %v869_v19, 16 }
  0x18   : > { %231 = vrot.lane.b32.xlu0 %v862_v3, %s912_s21  ;;  %v263_v17 = vor.u32 %v262_v12, %v258_v7  ;;  %v271_v18 = vor.u32 %v269_v10, %v267_v13  ;;  %v275_v20 = vrot.slane %v273_v15, 1  ;;  %v368_v28 = vshll.u32 %v870_v23, 16  ;;  %v873_v35 = vld [vmem:[%s963_s19 + $0x10] ss:$0 sps:$4 sm:$0x77]   ;;  %v875_v40 = vld [vmem:[%s963_s19 + $0x1c] sm:$0xff]  }
  0x19   : > { %v357_v27 = vrot.slane %v355_v22, 1  ;;  %v362_v30 = vrot.slane %v360_v25, 1  ;;  %v401_v37 = vshrl.u32 %v871_v31, 16  ;;  %v404_v38 = vshll.u32 %v871_v31, 16  ;;  %v878_v49 = vld [vmem:[%s963_s19 + $0x8] sm:$0xff]   ;;  %v880_v50 = vld [vmem:[%s963_s19] sm:$0xff]  }
  0x1a   : > { %v268_v24 = vsel %vm256_vm0, %v263_v17, %v267_v13  ;;  %v276_v29 = vsel %vm256_vm0, %v271_v18, %v275_v20  ;;  %v370_v34 = vrot.slane %v368_v28, 1  ;;  %v409_v39 = vshrl.u32 %v872_v32, 16  ;;  %v874_v54 = vld [vmem:[%s963_s19 + $0x14] sm:$0xfc]   ;;  %212 = vst.msk [vmem:[#allocation2] sm:$0xff] %vm211_vm1, %v880_v50  ;;  %v881_v12 = vld [vmem:[%s963_s19 + $0x8] sm:$0xff]  }
  0x1b   : > { %277 = vrot.lane.b32.xlu1 %v268_v24, %s914_s23  ;;  %v358_v33 = vor.u32 %v357_v27, %v353_v21  ;;  %v366_v36 = vor.u32 %v364_v26, %v362_v30  ;;  %v412_v42 = vshll.u32 %v872_v32, 16  ;;  %v418_v43 = vshrl.u32 %v873_v35, 16  ;;  %v876_v58 = vld [vmem:[%s963_s19 + $0x24] ss:$0 sps:$4 sm:$0x77]   ;;  %213 = vst.msk [vmem:[#allocation2 + $0x8] sm:$0xff] %vm211_vm1, %v881_v12 }
  0x1c   : > { %301 = vrot.lane.b32.xlu0 %v865_v6, %s911_s20  ;;  %v421_v44 = vshll.u32 %v873_v35, 16  ;;  %v403_v46 = vrot.slane %v401_v37, 2  ;;  %v406_v47 = vrot.slane %v404_v38, 3  ;;  %v411_v48 = vrot.slane %v409_v39, 2  ;;  %v877_v7 = vld [vmem:[%s963_s19] sm:$0xf8]   ;;  %s192_s20 = scalar_lea.vmem %s1036_s3, %s799_s17 }
  0x1d   : > { %v363_v41 = vsel %vm256_vm0, %v358_v33, %v362_v30  ;;  %v371_v45 = vsel %vm256_vm0, %v366_v36, %v370_v34  ;;  %v414_v51 = vrot.slane %v412_v42, 3  ;;  %v420_v52 = vrot.slane %v418_v43, 2  ;;  %v879_v15 = vld [vmem:[%s963_s19 + $0x10] ss:$0 sps:$4 sm:$0x77]   ;;  %v882_v19 = vld [vmem:[%s1034_s1] sm:$0xff]  }
  0x1e   : > { %v423_v53 = vrot.slane %v421_v44, 3  ;;  %v462_v55 = vshrl.u32 %v875_v40, 16  ;;  %v407_v56 = vor.u32 %v406_v47, %v403_v46  ;;  %v465_v57 = vshll.u32 %v875_v40, 16  ;;  %v883_v20 = vld [vmem:[%s1034_s1 + $0x8] sm:$0xff]   ;;  %811 = vmatprep.subr.bf16.mxu0 %v882_v19  ;;  %v884_v24 = vld [vmem:[%s1034_s1 + $0x10] sm:$0xff]   ;;  %v885_v25 = vld [vmem:[%s1034_s1 + $0x18] sm:$0xff]  }
  0x1f   : > { %279 = vrot.lane.b32.xlu1 %v276_v29, %s914_s23  ;;  %v415_v59 = vor.u32 %v414_v51, %v411_v48  ;;  %v454_v61 = vshrl.u32 %v874_v54, 16  ;;  %v457_v62 = vshll.u32 %v874_v54, 16  ;;  %v471_v1 = vshrl.u32 %v876_v58, 16  ;;  %812 = vmatpush3.bf16.msra.mxu0 %v882_v19  ;;  %v886_v26 = vld [vmem:[%s1034_s1 + $0x20] ss:$0 sps:$4 sm:$0xff]  }
  0x20   : > { %325 = vrot.lane.b32.xlu0 %v867_v14, %s913_s22  ;;  %v424_v60 = vor.u32 %v423_v53, %v420_v52  ;;  %v464_v63 = vrot.slane %v462_v55, 2  ;;  %v467_v0 = vrot.slane %v465_v57, 3  ;;  %v474_v2 = vshll.u32 %v876_v58, 16  ;;  %813 = vmatprep.subr.bf16.mxu0 %v883_v20  ;;  %v785_v46 = vld [vmem:[%s1035_s2] ss:$0 sm:$0xff] }
  0x21   : > { %v416_v3 = vsel %vm399_vm2, %v407_v56, %v415_v59  ;;  %v456_v5 = vrot.slane %v454_v61, 2  ;;  %v459_v6 = vrot.slane %v457_v62, 3  ;;  %v473_v9 = vrot.slane %v471_v1, 2 }
  0x22   : > { %v425_v4 = vsel %vm399_vm2, %v415_v59, %v424_v60  ;;  %v468_v8 = vor.u32 %v467_v0, %v464_v63  ;;  %v476_v10 = vrot.slane %v474_v2, 3  ;;  %v508_v11 = vrot.slane %v878_v49, 3 }
  0x23   : > { %374 = vrot.lane.b32.xlu1 %v371_v45, %s915_s24  ;;  %v460_v13 = vor.u32 %v459_v6, %v456_v5  ;;  %v507_v14 = vrot.slane %v877_v7, 3  ;;  %v510_v18 = vrot.slane %v879_v15, 3  ;;  %814 = vmatpush3.bf16.msra.mxu0 %v883_v20  ;;  %v575_v27 = vsel %vm573_vm4, %v886_v26, 0 }
  0x24   : > { %372 = vrot.lane.b32.xlu0 %v363_v41, %s915_s24  ;;  %v477_v16 = vor.u32 %v476_v10, %v473_v9  ;;  %815 = vmatprep.subr.bf16.mxu0 %v884_v24 }
  0x25   : > { %v469_v17 = vsel %vm399_vm2, %v460_v13, %v468_v8  ;;  %v509_v22 = vsel %vm506_vm3, %v507_v14, %v508_v11  ;;  %v511_v23 = vsel %vm506_vm3, %v508_v11, %v510_v18 }
  0x26   : > { %v478_v21 = vsel %vm399_vm2, %v468_v8, %v477_v16 }
  0x27   : > { %428 = vrot.lane.b32.xlu1 %v425_v4, %s916_s25  ;;  %816 = vmatpush3.bf16.msra.mxu0 %v884_v24 }
  0x28   : > { %426 = vrot.lane.b32.xlu0 %v416_v3, %s916_s25  ;;  %817 = vmatprep.subr.bf16.mxu0 %v885_v25 }
  0x2b   : > { %481 = vrot.lane.b32.xlu1 %v478_v21, %s917_s30  ;;  %818 = vmatpush3.bf16.msra.mxu0 %v885_v25 }
  0x2c   : > { %479 = vrot.lane.b32.xlu0 %v469_v17, %s917_s30  ;;  %825 = vmatprep.subr.msk.bf16.mxu0 %vm573_vm4, %v886_v26 }
  0x2f   : > { %514 = vrot.lane.b32.xlu1 %v511_v23, %s918_s6  ;;  %820 = vmatpush3.bf16.msra.mxu0 %v575_v27 }
  0x30   : > { %512 = vrot.lane.b32.xlu0 %v509_v22, %s918_s6 }
  0x85   : > { %v304_v28 = vpop.permute.xlu1 %303 }
  0x86   : > { %v230_v29 = vpop.permute.xlu0 %229 }
  0x87   : > { %236 = vst.msk [vmem:[#allocation2] sm:$0xff] %vm235_vm5, %v230_v29 }
  0x89   : > { %v328_v31 = vpop.permute.xlu1 %327 }
  0x8a   : > { %v232_v30 = vpop.permute.xlu0 %231 }
  0x8b   : > { %237 = vst.msk [vmem:[#allocation2 + $0x8] sm:$0xff] %vm235_vm5, %v232_v30 }
  0x8d   : > { %v278_v33 = vpop.permute.xlu1 %277 }
  0x8e   : > { %v302_v32 = vpop.permute.xlu0 %301  ;;  %284 = vst.msk [vmem:[#allocation2] sm:$0xff] %vm283_vm6, %v278_v33 }
  0x8f   : > { %308 = vst.msk [vmem:[#allocation2] sm:$0xff] %vm307_vm7, %v302_v32 }
  0x91   : > { %v280_v35 = vpop.permute.xlu1 %279 }
  0x92   : > { %v326_v34 = vpop.permute.xlu0 %325  ;;  %285 = vst.msk [vmem:[#allocation2 + $0x8] sm:$0xff] %vm283_vm6, %v280_v35 }
  0x93   : > { %332 = vst.msk [vmem:[#allocation2] sm:$0xff] %vm331_vm8, %v326_v34 }
  0x94   : > { %309 = vst.msk [vmem:[#allocation2 + $0x8] sm:$0xff] %vm307_vm7, %v304_v28 }
  0x95   : > { %333 = vst.msk [vmem:[#allocation2 + $0x8] sm:$0xff] %vm331_vm8, %v328_v31  ;;  %v375_v37 = vpop.permute.xlu1 %374 }
  0x96   : > { %v373_v36 = vpop.permute.xlu0 %372  ;;  %380 = vst.msk [vmem:[#allocation2 + $0x8] sm:$0xff] %vm378_vm9, %v375_v37 }
  0x97   : > { %379 = vst.msk [vmem:[#allocation2] sm:$0xff] %vm378_vm9, %v373_v36 }
  0x99   : > { %v429_v39 = vpop.permute.xlu1 %428 }
  0x9a   : > { %v427_v38 = vpop.permute.xlu0 %426  ;;  %434 = vst.msk [vmem:[#allocation2 + $0x8] sm:$0xff] %vm432_vm10, %v429_v39 }
  0x9b   : > { %433 = vst.msk [vmem:[#allocation2] sm:$0xff] %vm432_vm10, %v427_v38 }
  0x9d   : > { %v482_v41 = vpop.permute.xlu1 %481 }
  0x9e   : > { %v480_v40 = vpop.permute.xlu0 %479  ;;  %487 = vst.msk [vmem:[#allocation2 + $0x8] sm:$0xff] %vm485_vm11, %v482_v41 }
  0x9f   : > { %486 = vst.msk [vmem:[#allocation2] sm:$0xff] %vm485_vm11, %v480_v40 }
  0xa1   : > { %v515_v43 = vpop.permute.xlu1 %514 }
  0xa2   : > { %v513_v42 = vpop.permute.xlu0 %512  ;;  %520 = vst.msk [vmem:[#allocation2 + $0x8] sm:$0xff] %vm518_vm12, %v515_v43 }
  0xa3   : > { %519 = vst.msk [vmem:[#allocation2] sm:$0xff] %vm518_vm12, %v513_v42 }
  0xa9   : > { %v522_v45 = vld [vmem:[#allocation2 + $0x8] sm:$0xff] }
  0xaa   : > { %v521_v44 = vld [vmem:[#allocation2] sm:$0xff] }
  0xab   : > { %821 = vmatprep.mubr.msk.bf16.mxu0 %vm566_vm13, %v521_v44 }
  0xac   : > { %822 = vmatmul.mubr.msk.bf16.vlgmr.msra.gmra.mrb[0].mxu0 %vm566_vm13, %v522_v45 }
 0x17f   : > { %v823_v47 = vpop.f32.mrb[0].mxu0 }
 0x180   : > { %v620_v48 = vadd.f32 %v823_v47, %v785_v46  ;;  %v611_v49 = vpop.f32.mrb[1].mxu0 }
 0x181   : > { %v612_v50 = vadd.f32 %v785_v46, %v611_v49  ;;  %v824_v51 = vpop.f32.mrb[2].mxu0 }
 0x182   : > { %v628_v52 = vmax.f32 %v620_v48, 0.0  ;;  %v623_v53 = vadd.f32 %v824_v51, %v785_v46  ;;  %v614_v54 = vpop.f32.mrb[3].mxu0 }
 0x183   : > { %v626_v55 = vmax.f32 %v612_v50, 0.0  ;;  %v615_v56 = vadd.f32 %v785_v46, %v614_v54 }
 0x184   : > { %v802_v57 = vpack.c.bf16 %v628_v52, %v628_v52  ;;  %v629_v58 = vmax.f32 %v623_v53, 0.0 }
 0x185   : > { %v800_v59 = vpack.c.bf16 %v626_v55, %v626_v55  ;;  %v627_v60 = vmax.f32 %v615_v56, 0.0 }
 0x186   : > { %649 = vst.msk [vmem:[%s192_s20 + $0x8] sm:$0xf] %vm646_vm14, %v802_v57  ;;  %v803_v61 = vpack.c.bf16 %v629_v58, %v629_v58 }
 0x187   : > { %647 = vst.msk [vmem:[%s192_s20] sm:$0xf] %vm646_vm14, %v800_v59  ;;  %v801_v62 = vpack.c.bf16 %v627_v60, %v627_v60 }
 0x188   : > { %650 = vst.msk [vmem:[%s192_s20 + $0xc] sm:$0xf] %vm646_vm14, %v803_v61 }
 0x189   : > { %648 = vst.msk [vmem:[%s192_s20 + $0x4] sm:$0xf] %vm646_vm14, %v801_v62 }
 0x18a PF: > { %s13_s14 = sadd.s32 1, %s909_s14   ;;  %s1037_s12 = smov %s905_s13 }
 0x18b   : > { %p10_p5 = scmp.ge.s32.totalorder %s13_s14, 4   ;;  %s1038_s13 = smov %s1040_s15 }
 0x18d   :  { %12 = sbr.rel (!%p10_p5) target bundleno = 2 (0x2), region = 65 }

// kernel: base_encoder_forward.5
= control target key start
LH: loop header
LB: loop body
LE: loop exit
PB: predicated region body
PF: predicated region fallthrough
CT: control target
= control target key end

     0   :  { %s764_s12 = smov 0   ;;  %s766_s13 = smov 0   ;;  %s864_s0 = inlined_call_operand.vmem [shape: bf16[2,4,21,16], index: 0, kind: input, shape index: {}]   ;;  %s865_s1 = inlined_call_operand.vmem [shape: bf16[144,32], index: 1, kind: input, shape index: {}]   ;;  %s866_s2 = inlined_call_operand.vmem [shape: f32[1,32], index: 2, kind: input, shape index: {}]   ;;  %s867_s3 = inlined_call_operand.vmem [shape: bf16[2,16,32], index: 3, kind: output, shape index: {}]  }
   0x1   :  { %s768_s14 = smov 0  }
   0x2 LB: > { %s25_s15 = sadd.s32 1, %s730_s13  ;;  %p608_p0 = scmp.ge.s32.totalorder %s734_s14, 1  ;;  %s734_s14 = sphi %s768_s14, %s13_s14   ;;  %s730_s13 = sphi %s766_s13, %s869_s13   ;;  %s726_s12 = sphi %s764_s12, %s868_s12  }
   0x3   : > { %p27_p1 = scmp.ge.s32.totalorder %s25_s15, 2  ;;  %p151_p2 = scmp.lt.s32.totalorder %s734_s14, 3 }
   0x5   : > { %s871_s15 = smov (%p27_p1, %s25_s15), 0  ;;  %p152_p3 = pnand %p608_p0, %p151_p2 }
   0x6   : > { %p179_p4 = scmp.lt.s32.totalorder (!%p152_p3), %s726_s12, 1  ;;  %v700_v0 = vld [vmem:[%s865_s1] sm:$0xff] (!%p152_p3)   ;;  %v736_v1 = vmov (!%p152_p3), 0   ;;  %v701_v2 = vld [vmem:[%s865_s1 + $0x8] sm:$0xff] (!%p152_p3)   ;;  %v702_v3 = vld [vmem:[%s865_s1 + $0x10] sm:$0xff] (!%p152_p3)   ;;  %s737_s26 = smov (!%p152_p3), 16  }
   0x7   : > { %155 = sbr.rel (%p152_p3) target bundleno = 378 (0x17a), region = 32  ;;  %469 = vmatprep.subr.bf16.mxu0 (!%p152_p3), %v736_v1  ;;  %vm229_vm0 = vsmask.f32 (!%p152_p3), 7424  ;;  %v703_v6 = vld [vmem:[%s865_s1 + $0x18] sm:$0xff] (!%p152_p3)   ;;  %s738_s29 = smov (!%p152_p3), 48   ;;  %vm203_vm1 = vcmask (!%p152_p3), 130048  }
   0x8   : > { %470 = vmatpush1.bf16.msra.mxu0 (!%p152_p3), %v700_v0  ;;  %s739_s30 = smov (!%p152_p3), 64   ;;  %vm312_vm2 = vsmask.f32 (!%p152_p3), 6400  ;;  %v707_v21 = vld [vmem:[%s865_s1 + $0x20] sm:$0xff] (!%p152_p3)   ;;  %vm379_vm3 = vcmask (!%p152_p3), 1045504   ;;  %s740_s6 = smov (!%p152_p3), 32  }
   0x9   : > { %471 = vmatprep.subr.bf16.mxu0 (!%p152_p3), %v736_v1  ;;  %v708_v35 = vld [vmem:[%s865_s1 + $0x28] sm:$0xff] (!%p152_p3)   ;;  %s741_s9 = smov (!%p152_p3), 80   ;;  %v709_v52 = vld [vmem:[%s865_s1 + $0x30] sm:$0xff] (!%p152_p3)   ;;  %s742_s16 = smov (!%p152_p3), 96   ;;  %v710_v60 = vld [vmem:[%s865_s1 + $0x38] sm:$0xff] (!%p152_p3)   ;;  %vm216_vm4 = vcmask (!%p152_p3), 261248  }
   0xa   : > { %s743_s19 = smov (!%p152_p3), 112   ;;  %v711_v62 = vld [vmem:[%s865_s1 + $0x40] sm:$0xff] (!%p152_p3)   ;;  %vm245_vm5 = vcmask (!%p152_p3), 392448   ;;  %vm258_vm6 = vcmask (!%p152_p3), 523648   ;;  %vm271_vm7 = vcmask (!%p152_p3), 654848   ;;  %vm299_vm8 = vcmask (!%p152_p3), 786048  }
   0xb   : > { %vm333_vm9 = vcmask (!%p152_p3), 917248   ;;  %vm366_vm10 = vcmask (!%p152_p3), 1048448   ;;  %vm520_vm11 = vcmask (!%p152_p3), 257024  }
   0xc   : > { %472 = vmatpush1.bf16.msra.mxu0 (!%p152_p3), %v701_v2 }
   0xd   : > { %473 = vmatprep.subr.bf16.mxu0 (!%p152_p3), %v736_v1 }
   0xe   : > { %s873_s12 = smov (!%p179_p4, %s726_s12), 1 }
   0xf   : > { %s656_s20 = smul.u32 48, %s873_s12  ;;  %s653_s24 = sshll.u32 %s873_s12, 3 }
  0x10   : > { %474 = vmatpush1.bf16.msra.mxu0 %v702_v3  ;;  %s192_s27 = scalar_lea.vmem %s867_s3, %s653_s24 }
  0x11   : > { %s796_s23 = scalar_lea.vmem %s864_s0, %s656_s20  ;;  %475 = vmatprep.subr.bf16.mxu0 %v736_v1 }
  0x12   : > { %v689_v4 = vld [vmem:[%s796_s23 + $0xc] sm:$0xff]   ;;  %v690_v5 = vld [vmem:[%s796_s23 + $0x18] sm:$0xff]   ;;  %v691_v7 = vld [vmem:[%s796_s23] sm:$0xff]  }
  0x13   : > { %213 = vrot.lane.b32.xlu0 %v689_v4, %s737_s26  ;;  %255 = vrot.lane.b32.xlu1 %v690_v5, %s738_s29  ;;  %v692_v8 = vld [vmem:[%s796_s23 + $0x8] ss:$0 sps:$4 sm:$0x11]   ;;  %v231_v10 = vshrl.u32 %v691_v7, 16  ;;  %v233_v11 = vshll.u32 %v691_v7, 16  ;;  %v694_v13 = vld [vmem:[%s796_s23 + $0x18] sm:$0xff]  }
  0x14   : > { %v693_v9 = vld [vmem:[%s796_s23 + $0x24] sm:$0xff]   ;;  %v238_v12 = vshll.u32 %v692_v8, 16  ;;  %v695_v14 = vld [vmem:[%s796_s23 + $0x20] ss:$0 sps:$4 sm:$0x11]   ;;  %v285_v18 = vshrl.u32 %v694_v13, 16  ;;  %476 = vmatpush1.bf16.msra.mxu0 %v703_v6 }
  0x15   : > { %v706_v15 = vld [vmem:[%s796_s23] sm:$0xff]   ;;  %v235_v16 = vrot.slane %v233_v11, 1  ;;  %v287_v19 = vshll.u32 %v694_v13, 16  ;;  %v292_v20 = vshll.u32 %v695_v14, 16  ;;  %477 = vmatprep.subr.bf16.mxu0 %v736_v1  ;;  %v698_v31 = vld [vmem:[%s796_s23 + $0xc] sm:$0xfe]  }
  0x16   : > { %v240_v17 = vrot.slane %v238_v12, 1  ;;  %204 = vst.msk [vmem:[#allocation2] sm:$0xff] %vm203_vm1, %v706_v15  ;;  %v696_v24 = vld [vmem:[%s796_s23] sm:$0xfe]   ;;  %v347_v39 = vshrl.u32 %v698_v31, 16  ;;  %v350_v42 = vshll.u32 %v698_v31, 16 }
  0x17   : > { %268 = vrot.lane.b32.xlu1 %v693_v9, %s739_s30  ;;  %v236_v22 = vor.u32 %v235_v16, %v231_v10  ;;  %v289_v23 = vrot.slane %v287_v19, 1  ;;  %v697_v25 = vld [vmem:[%s796_s23 + $0x8] ss:$0 sps:$4 sm:$0x33]   ;;  %v294_v26 = vrot.slane %v292_v20, 1  ;;  %v314_v29 = vshrl.u32 %v696_v24, 16 }
  0x18   : > { %v317_v30 = vshll.u32 %v696_v24, 16  ;;  %v322_v32 = vshrl.u32 %v697_v25, 16  ;;  %v325_v33 = vshll.u32 %v697_v25, 16  ;;  %v699_v34 = vld [vmem:[%s796_s23 + $0x14] ss:$0 sps:$4 sm:$0x33]   ;;  %478 = vmatpush1.bf16.msra.mxu0 %v707_v21 }
  0x19   : > { %v241_v27 = vsel %vm229_vm0, %v236_v22, %v240_v17  ;;  %v290_v28 = vor.u32 %v289_v23, %v285_v18  ;;  %v316_v37 = vrot.slane %v314_v29, 1  ;;  %479 = vmatprep.subr.bf16.mxu0 %v736_v1  ;;  %v355_v43 = vshrl.u32 %v699_v34, 16  ;;  %v704_v47 = vld [vmem:[%s796_s23] sm:$0xfc]   ;;  %v638_v8 = vld [vmem:[%s866_s2] ss:$0 sm:$0xff] }
  0x1a   : > { %242 = vrot.lane.b32.xlu0 %v241_v27, %s740_s6  ;;  %v319_v38 = vrot.slane %v317_v30, 2  ;;  %v324_v40 = vrot.slane %v322_v32, 1  ;;  %v327_v41 = vrot.slane %v325_v33, 2  ;;  %v349_v45 = vrot.slane %v347_v39, 1 }
  0x1b   : > { %v295_v36 = vsel %vm229_vm0, %v290_v28, %v294_v26  ;;  %v358_v46 = vshll.u32 %v699_v34, 16  ;;  %v352_v49 = vrot.slane %v350_v42, 2  ;;  %v357_v50 = vrot.slane %v355_v43, 1  ;;  %v705_v51 = vld [vmem:[%s796_s23 + $0x8] ss:$0 sps:$4 sm:$0x33]  }
  0x1c   : > { %v320_v44 = vor.u32 %v319_v38, %v316_v37  ;;  %v328_v48 = vor.u32 %v327_v41, %v324_v40  ;;  %480 = vmatpush1.bf16.msra.mxu0 %v708_v35  ;;  %v380_v54 = vrot.slane %v704_v47, 2  ;;  %v381_v57 = vrot.slane %v705_v51, 2 }
  0x1d   : > { %v360_v53 = vrot.slane %v358_v46, 2  ;;  %481 = vmatprep.subr.bf16.mxu0 %v736_v1  ;;  %v353_v56 = vor.u32 %v352_v49, %v349_v45 }
  0x1e   : > { %296 = vrot.lane.b32.xlu0 %v295_v36, %s741_s9  ;;  %v329_v55 = vsel %vm312_vm2, %v320_v44, %v328_v48  ;;  %v382_v59 = vsel %vm379_vm3, %v380_v54, %v381_v57 }
  0x1f   : > { %330 = vrot.lane.b32.xlu1 %v329_v55, %s742_s16  ;;  %v361_v58 = vor.u32 %v360_v53, %v357_v50  ;;  %384 = vst.msk [vmem:[#allocation2 + $0x8] sm:$0xff] %vm203_vm1, %v382_v59 }
  0x20   : > { %482 = vmatpush1.bf16.msra.mxu0 %v709_v52 }
  0x21   : > { %v362_v61 = vsel %vm312_vm2, %v353_v56, %v361_v58  ;;  %483 = vmatprep.subr.bf16.mxu0 %v736_v1 }
  0x22   : > { %363 = vrot.lane.b32.xlu0 %v362_v61, %s743_s19 }
  0x24   : > { %484 = vmatpush1.bf16.msra.mxu0 %v710_v60 }
  0x25   : > { %485 = vmatprep.subr.bf16.mxu0 %v736_v1 }
  0x26   : > { %v386_v63 = vld [vmem:[#allocation2 + $0x8] sm:$0xff] }
  0x27   : > { %648 = vmatprep.mubr.msk.bf16.mxu0 %vm203_vm1, %v386_v63 }
  0x28   : > { %486 = vmatpush1.bf16.msra.mxu0 %v711_v62 }
  0x85   : > { %v214_v0 = vpop.permute.xlu0 %213  ;;  %v256_v2 = vpop.permute.xlu1 %255 }
  0x86   : > { %217 = vst.msk [vmem:[#allocation2] sm:$0xff] %vm216_vm4, %v214_v0 }
  0x89   : > { %v269_v4 = vpop.permute.xlu1 %268 }
  0x8c   : > { %v243_v3 = vpop.permute.xlu0 %242 }
  0x8d   : > { %246 = vst.msk [vmem:[#allocation2] sm:$0xff] %vm245_vm5, %v243_v3 }
  0x8e   : > { %259 = vst.msk [vmem:[#allocation2] sm:$0xff] %vm258_vm6, %v256_v2 }
  0x8f   : > { %272 = vst.msk [vmem:[#allocation2] sm:$0xff] %vm271_vm7, %v269_v4 }
  0x90   : > { %v297_v5 = vpop.permute.xlu0 %296 }
  0x91   : > { %300 = vst.msk [vmem:[#allocation2] sm:$0xff] %vm299_vm8, %v297_v5  ;;  %v331_v1 = vpop.permute.xlu1 %330 }
  0x92   : > { %334 = vst.msk [vmem:[#allocation2] sm:$0xff] %vm333_vm9, %v331_v1 }
  0x94   : > { %v364_v6 = vpop.permute.xlu0 %363 }
  0x95   : > { %367 = vst.msk [vmem:[#allocation2] sm:$0xff] %vm366_vm10, %v364_v6 }
  0x9c   : > { %v385_v7 = vld [vmem:[#allocation2] sm:$0xff] }
  0x9d   : > { %502 = vmatmul.mubr.bf16.vlgmr.msra.gmra.mrb[0].mxu0 %v385_v7 }
 0x170   : > { %v503_v9 = vpop.f32.mrb[0].mxu0 }
 0x171   : > { %v504_v10 = vadd.f32 %v638_v8, %v503_v9  ;;  %v505_v11 = vpop.f32.mrb[1].mxu0 }
 0x172   : > { %v506_v12 = vpop.f32.mrb[2].mxu0 }
 0x173   : > { %v510_v13 = vmax.f32 %v504_v10, 0.0  ;;  %v507_v14 = vadd.f32 %v638_v8, %v506_v12  ;;  %v508_v15 = vpop.f32.mrb[3].mxu0 }
 0x175   : > { %v654_v16 = vpack.c.bf16 %v510_v13, %v510_v13  ;;  %v511_v17 = vmax.f32 %v507_v14, 0.0 }
 0x177   : > { %521 = vst.msk [vmem:[%s192_s27] sm:$0xf] %vm520_vm11, %v654_v16  ;;  %v655_v18 = vpack.c.bf16 %v511_v17, %v511_v17 }
 0x179   : > { %522 = vst.msk [vmem:[%s192_s27 + $0x4] sm:$0xf] %vm520_vm11, %v655_v18 }
 0x17a PF: > { %s13_s14 = sadd.s32 1, %s734_s14   ;;  %s868_s12 = smov %s730_s13 }
 0x17b   : > { %p10_p5 = scmp.ge.s32.totalorder %s13_s14, 4   ;;  %s869_s13 = smov %s871_s15 }
 0x17d   :  { %12 = sbr.rel (!%p10_p5) target bundleno = 2 (0x2), region = 65 }

</bundles_post_ra>
